<compile_context>
chip_gen: v6e
topology: v6e:2x2x1
jax: 0.10.0
libtpu: 0.0.40
codegen_flags: <defaults>
</compile_context>

<pallas_src>
import functools
import math

import jax
import jax.numpy as jnp
from jax.experimental import pallas as pl
from jax.experimental.pallas import tpu as pltpu


# ----------------------------------------------------------------------------
# Kernel 1: fused multi-head attention + residual add + LayerNorm.
#   grid = (B, q_tiles, k_tiles); k axis is a flash-style reduction.
#   query == residual and key == value in this module, so the kernel takes
#   only (q, kv) and reuses q as the residual.
# ----------------------------------------------------------------------------
def _mha_ln_kernel(q_ref, kv_ref, mask_ref,
                   wq_ref, wk_ref, wv_ref, wo_ref, bo_ref, g_ref, beta_ref,
                   o_ref,
                   qp_ref, m_ref, l_ref, acc_ref,
                   *, num_heads, k_len, k_tile, eps, compute_dtype):
    ki = pl.program_id(2)
    nk = pl.num_programs(2)
    dh = q_ref.shape[-1] // num_heads
    cdt = compute_dtype

    # ---- first k step: init online-softmax state, project + cache queries.
    @pl.when(ki == 0)
    def _init():
        m_ref[...] = jnp.full_like(m_ref, -jnp.inf)
        l_ref[...] = jnp.zeros_like(l_ref)
        acc_ref[...] = jnp.zeros_like(acc_ref)
        q = q_ref[0]                                           # (TQ, E)
        for h in range(num_heads):
            qp_ref[h] = jnp.dot(q[:, h * dh:(h + 1) * dh].astype(cdt),
                                wq_ref[...].astype(cdt),       # scale folded in
                                preferred_element_type=jnp.float32)

    # ---- user mask (compact) + key-validity mask for ragged last K tile.
    mask = mask_ref[0]                                         # (1 or TQ, TK)
    kpos = ki * k_tile + jax.lax.broadcasted_iota(jnp.int32, (1, k_tile), 1)
    keep = jnp.logical_and(mask != 0.0, kpos < k_len)
    neg = jnp.float32(-1e20)

    kv = kv_ref[0]                                             # (TK, E)
    for h in range(num_heads):                                 # static unroll
        sl = slice(h * dh, (h + 1) * dh)
        kh = jnp.dot(kv[:, sl].astype(cdt), wk_ref[...].astype(cdt),
                     preferred_element_type=jnp.float32)       # (TK, dh)
        vh = jnp.dot(kv[:, sl].astype(cdt), wv_ref[...].astype(cdt),
                     preferred_element_type=jnp.float32)       # (TK, dh)
        # scores = q_proj @ k_proj^T  (contract last dims, no explicit .T)
        s = jax.lax.dot_general(qp_ref[h].astype(cdt), kh.astype(cdt),
                                (((1,), (1,)), ((), ())),
                                preferred_element_type=jnp.float32)  # (TQ, TK)
        s = jnp.where(keep, s, neg)
        m_prev = m_ref[h]                                      # (TQ, 1)
        m_new = jnp.maximum(m_prev, jnp.max(s, axis=-1, keepdims=True))
        alpha = jnp.exp(m_prev - m_new)
        p = jnp.exp(s - m_new)
        l_ref[h] = alpha * l_ref[h] + jnp.sum(p, axis=-1, keepdims=True)
        acc_ref[h] = alpha * acc_ref[h] + jnp.dot(
            p.astype(cdt), vh.astype(cdt), preferred_element_type=jnp.float32)
        m_ref[h] = m_new

    # ---- last k step: normalize, output-project, bias + residual + LayerNorm.
    @pl.when(ki == nk - 1)
    def _fin():
        out = jnp.zeros(o_ref.shape[1:], jnp.float32)          # (TQ, E)
        for h in range(num_heads):
            ctx = acc_ref[h] * pl.reciprocal(l_ref[h], approx=True)
            out = out + jnp.dot(ctx.astype(cdt), wo_ref[h].astype(cdt),
                                preferred_element_type=jnp.float32)
        x = out + bo_ref[...] + q_ref[0]                       # bias + residual
        mean = jnp.mean(x, axis=-1, keepdims=True)
        xc = x - mean
        var = jnp.mean(xc * xc, axis=-1, keepdims=True)
        inv = jax.lax.rsqrt(var + eps)
        o_ref[0] = (xc * inv * g_ref[...] + beta_ref[...]).astype(o_ref.dtype)


def mha_ln_pallas(q, kv, mask, wq_t, wk_t, wv_t, wo_heads, bo, gamma, beta,
                  num_heads, *, eps=1e-5, compute_dtype=jnp.float32,
                  q_tile=256, k_tile=512):
    """Fused attention(q, kv, kv, mask) + bias + residual(q) + LayerNorm."""
    B, Lq, E = q.shape
    Lk = kv.shape[1]
    dh = E // num_heads
    Mq = mask.shape[1]                       # 1 (padding mask) or Lq (causal)

    TQ = Lq if Lq <= q_tile else q_tile
    TK = Lk if Lk <= k_tile else k_tile
    nq = pl.cdiv(Lq, TQ)
    nk = pl.cdiv(Lk, TK)
    mq_blk = 1 if Mq == 1 else TQ

    def q_map(b, qi, ki):
        return (b, qi, 0)

    def kv_map(b, qi, ki):
        return (b, ki, 0)

    if Mq == 1:
        def mask_map(b, qi, ki):
            return (b, 0, ki)
    else:
        def mask_map(b, qi, ki):
            return (b, qi, ki)

    def w2_map(b, qi, ki):
        return (0, 0)

    def w3_map(b, qi, ki):
        return (0, 0, 0)

    kernel = functools.partial(_mha_ln_kernel, num_heads=num_heads,
                               k_len=Lk, k_tile=TK, eps=eps,
                               compute_dtype=compute_dtype)
    return pl.pallas_call(
        kernel,
        out_shape=jax.ShapeDtypeStruct((B, Lq, E), q.dtype),
        grid=(B, nq, nk),
        in_specs=[
            pl.BlockSpec((1, TQ, E), q_map),
            pl.BlockSpec((1, TK, E), kv_map),
            pl.BlockSpec((1, mq_blk, TK), mask_map),
            pl.BlockSpec((dh, dh), w2_map),
            pl.BlockSpec((dh, dh), w2_map),
            pl.BlockSpec((dh, dh), w2_map),
            pl.BlockSpec((num_heads, dh, E), w3_map),
            pl.BlockSpec((1, E), w2_map),
            pl.BlockSpec((1, E), w2_map),
            pl.BlockSpec((1, E), w2_map),
        ],
        out_specs=pl.BlockSpec((1, TQ, E), q_map),
        scratch_shapes=[
            pltpu.VMEM((num_heads, TQ, dh), jnp.float32),   # cached q proj
            pltpu.VMEM((num_heads, TQ, 1), jnp.float32),    # running max m
            pltpu.VMEM((num_heads, TQ, 1), jnp.float32),    # running sum l
            pltpu.VMEM((num_heads, TQ, dh), jnp.float32),   # output acc
        ],
        compiler_params=pltpu.CompilerParams(
            dimension_semantics=("parallel", "parallel", "arbitrary")),
    )(q, kv, mask, wq_t, wk_t, wv_t, wo_heads,
      bo.reshape(1, E), gamma.reshape(1, E), beta.reshape(1, E))


# ----------------------------------------------------------------------------
# Kernel 2: fused FFN (Linear -> ReLU -> Linear) + residual add + LayerNorm,
#           row-tiled over B*L rows (parallel grid), weights resident.
# ----------------------------------------------------------------------------
def _ffn_ln_kernel(x_ref, w1_ref, b1_ref, w2_ref, b2_ref, g_ref, beta_ref,
                   o_ref, *, eps, compute_dtype):
    cdt = compute_dtype
    x = x_ref[...]                                             # (TM, E) f32
    h = jnp.dot(x.astype(cdt), w1_ref[...].astype(cdt),
                preferred_element_type=jnp.float32) + b1_ref[...]
    h = jnp.maximum(h, 0.0)
    y = jnp.dot(h.astype(cdt), w2_ref[...].astype(cdt),
                preferred_element_type=jnp.float32) + b2_ref[...]
    z = y + x                                                  # residual
    mean = jnp.mean(z, axis=-1, keepdims=True)
    zc = z - mean
    var = jnp.mean(zc * zc, axis=-1, keepdims=True)
    inv = jax.lax.rsqrt(var + eps)
    o_ref[...] = (zc * inv * g_ref[...] + beta_ref[...]).astype(o_ref.dtype)


def ffn_ln_pallas(x, w1_t, b1, w2_t, b2, gamma, beta, *, eps=1e-5,
                  compute_dtype=jnp.float32, row_tile=512):
    B, L, E = x.shape
    H = w1_t.shape[1]
    R = B * L
    TM = R if R <= row_tile else row_tile
    kernel = functools.partial(_ffn_ln_kernel, eps=eps,
                               compute_dtype=compute_dtype)
    out = pl.pallas_call(
        kernel,
        out_shape=jax.ShapeDtypeStruct((R, E), x.dtype),
        grid=(pl.cdiv(R, TM),),
        in_specs=[
            pl.BlockSpec((TM, E), lambda i: (i, 0)),
            pl.BlockSpec((E, H), lambda i: (0, 0)),
            pl.BlockSpec((1, H), lambda i: (0, 0)),
            pl.BlockSpec((H, E), lambda i: (0, 0)),
            pl.BlockSpec((1, E), lambda i: (0, 0)),
            pl.BlockSpec((1, E), lambda i: (0, 0)),
            pl.BlockSpec((1, E), lambda i: (0, 0)),
        ],
        out_specs=pl.BlockSpec((TM, E), lambda i: (i, 0)),
        compiler_params=pltpu.CompilerParams(
            dimension_semantics=("parallel",)),
    )(x.reshape(R, E), w1_t, b1.reshape(1, H), w2_t, b2.reshape(1, E),
      gamma.reshape(1, E), beta.reshape(1, E))
    return out.reshape(B, L, E)


# ----------------------------------------------------------------------------
# Parameters (deterministic init) & DecoderBlock orchestration.
# ----------------------------------------------------------------------------
def init_params(key, E, num_heads, forward_expansion):
    dh = E // num_heads
    hid = forward_expansion * E
    ks = jax.random.split(key, 20)

    def w(k, shape, s=0.02):
        return jax.random.normal(k, shape, jnp.float32) * s

    p = {}
    # decoder self-attention: per-head projections (shared across heads) + fc_out
    p['sa_wq'] = w(ks[0], (dh, dh)); p['sa_wk'] = w(ks[1], (dh, dh))
    p['sa_wv'] = w(ks[2], (dh, dh))
    p['sa_wo'] = w(ks[3], (E, E));   p['sa_bo'] = w(ks[4], (E,))
    # decoder block's layer_norm
    p['ln_g'] = 1.0 + w(ks[5], (E,), 0.01); p['ln_b'] = w(ks[6], (E,), 0.01)
    # encoder-decoder cross attention block
    p['ca_wq'] = w(ks[7], (dh, dh)); p['ca_wk'] = w(ks[8], (dh, dh))
    p['ca_wv'] = w(ks[9], (dh, dh))
    p['ca_wo'] = w(ks[10], (E, E));  p['ca_bo'] = w(ks[11], (E,))
    p['n1_g'] = 1.0 + w(ks[12], (E,), 0.01); p['n1_b'] = w(ks[13], (E,), 0.01)
    p['n2_g'] = 1.0 + w(ks[14], (E,), 0.01); p['n2_b'] = w(ks[15], (E,), 0.01)
    # feed-forward (PyTorch layout: W1 (hid, E), W2 (E, hid))
    p['w1'] = w(ks[16], (hid, E)); p['b1'] = w(ks[17], (hid,))
    p['w2'] = w(ks[18], (E, hid)); p['b2'] = w(ks[19], (E,))
    return p


def decoder_block_pallas(params, tgt, src, src_mask, tgt_mask, num_heads,
                         compute_dtype=jnp.float32):
    B, Lt, E = tgt.shape
    dh = E // num_heads
    scale = 1.0 / math.sqrt(E)   # classic impl divides energy by sqrt(embed)

    # compact masks: only squeeze the singleton head axis; no (B, Lq, Lk)
    # broadcast of the padding mask is materialized in HBM.
    tmask = tgt_mask[:, 0].astype(jnp.float32)        # (B, Lt, Lt)
    smask = src_mask[:, 0].astype(jnp.float32)        # (B, 1,  Ls)

    def prep(wq, wk, wv, wo):
        # per-head Linear applies x @ W.T; fold 1/sqrt(E) into the q weight;
        # split fc_out's W.T row-wise by head for the distributed projection.
        return (wq.T * scale, wk.T, wv.T, wo.T.reshape(num_heads, dh, E))

    sa_wq, sa_wk, sa_wv, sa_wo = prep(params['sa_wq'], params['sa_wk'],
                                      params['sa_wv'], params['sa_wo'])
    ca_wq, ca_wk, ca_wv, ca_wo = prep(params['ca_wq'], params['ca_wk'],
                                      params['ca_wv'], params['ca_wo'])

    # 1) masked self-attention + residual + layer_norm (dropout == identity)
    x = mha_ln_pallas(tgt, tgt, tmask, sa_wq, sa_wk, sa_wv, sa_wo,
                      params['sa_bo'], params['ln_g'], params['ln_b'],
                      num_heads, compute_dtype=compute_dtype)
    # 2) encoder-decoder attention + residual + norm1 (fused)
    y = mha_ln_pallas(x, src, smask, ca_wq, ca_wk, ca_wv, ca_wo,
                      params['ca_bo'], params['n1_g'], params['n1_b'],
                      num_heads, compute_dtype=compute_dtype)
    # 3) feed-forward + residual + norm2 (fused)
    out = ffn_ln_pallas(y, params['w1'].T, params['b1'],
                        params['w2'].T, params['b2'],
                        params['n2_g'], params['n2_b'],
                        compute_dtype=compute_dtype)
    return out


# ----------------------------------------------------------------------------
# Pure-JAX reference (mirrors the PyTorch semantics) for a correctness check.
# ----------------------------------------------------------------------------
def _mha_ref(q, k, v, mask, wq, wk, wv, wo, bo, num_heads):
    B, Lq, E = q.shape
    Lk = k.shape[1]
    dh = E // num_heads
    qh = q.reshape(B, Lq, num_heads, dh) @ wq.T
    kh = k.reshape(B, Lk, num_heads, dh) @ wk.T
    vh = v.reshape(B, Lk, num_heads, dh) @ wv.T
    energy = jnp.einsum('bqhd,bkhd->bhqk', qh, kh)
    energy = jnp.where(mask == 0, -1e20, energy)
    attn = jax.nn.softmax(energy / jnp.sqrt(jnp.float32(E)), axis=-1)
    out = jnp.einsum('bhqk,bkhd->bqhd', attn, vh).reshape(B, Lq, E)
    return out @ wo.T + bo


def _ln_ref(x, g, b, eps=1e-5):
    mean = x.mean(-1, keepdims=True)
    var = ((x - mean) ** 2).mean(-1, keepdims=True)
    return (x - mean) / jnp.sqrt(var + eps) * g + b


def decoder_block_ref(params, tgt, src, src_mask, tgt_mask, num_heads):
    sa = _mha_ref(tgt, tgt, tgt, tgt_mask, params['sa_wq'], params['sa_wk'],
                  params['sa_wv'], params['sa_wo'], params['sa_bo'], num_heads)
    x = _ln_ref(sa + tgt, params['ln_g'], params['ln_b'])
    ca = _mha_ref(x, src, src, src_mask, params['ca_wq'], params['ca_wk'],
                  params['ca_wv'], params['ca_wo'], params['ca_bo'], num_heads)
    y = _ln_ref(ca + x, params['n1_g'], params['n1_b'])
    ff = jnp.maximum(y @ params['w1'].T + params['b1'], 0.0) @ params['w2'].T + params['b2']
    return _ln_ref(ff + y, params['n2_g'], params['n2_b'])


# ----------------------------------------------------------------------------
if __name__ == "__main__":
    B, Lt, Ls = 2, 8, 8
    E, num_heads, forward_expansion = 32, 4, 4

    key = jax.random.PRNGKey(0)
    k_tgt, k_src, k_par = jax.random.split(key, 3)

    tgt = jax.random.normal(k_tgt, (B, Lt, E), jnp.float32)
    src = jax.random.normal(k_src, (B, Ls, E), jnp.float32)

    # causal target mask (B, 1, Lt, Lt); padding-style source mask (B, 1, 1, Ls)
    tgt_mask = jnp.broadcast_to(
        jnp.tril(jnp.ones((Lt, Lt), jnp.float32))[None, None], (B, 1, Lt, Lt))
    src_lens = jnp.array([Ls, Ls - 2])
    src_mask = (jnp.arange(Ls)[None, :] < src_lens[:, None]
                ).astype(jnp.float32).reshape(B, 1, 1, Ls)

    params = init_params(k_par, E, num_heads, forward_expansion)
    ref = decoder_block_ref(params, tgt, src, src_mask, tgt_mask, num_heads)

    # f32 MXU path (parity with the fp32 PyTorch forward).  Tolerance covers
    # the approximate EUP reciprocal used for the softmax denominator.
    out = decoder_block_pallas(params, tgt, src, src_mask, tgt_mask, num_heads)
    out = jax.block_until_ready(out)
    assert out.shape == (B, Lt, E), out.shape
    err32 = float(jnp.max(jnp.abs(out - ref)))
    assert jnp.allclose(out, ref, atol=5e-3, rtol=5e-3), err32

    # bf16 MXU path (v6e/v7x): bf16 matmul operands, f32 accumulation & stats.
    out_bf16 = decoder_block_pallas(params, tgt, src, src_mask, tgt_mask,
                                    num_heads, compute_dtype=jnp.bfloat16)
    out_bf16 = jax.block_until_ready(out_bf16)
    err16 = float(jnp.max(jnp.abs(out_bf16 - ref)))
    assert jnp.allclose(out_bf16, ref, atol=1e-1, rtol=1e-1), err16

    print("KERNEL_OK")
</pallas_src>

<mosaic_0001>
module attributes {stable_mosaic.version = 11 : i64} {
  func.func @_mha_ln_kernel(%arg0: i32, %arg1: i32, %arg2: i32, %arg3: memref<1x8x32xf32, #tpu.memory_space<vmem>>, %arg4: memref<1x8x32xf32, #tpu.memory_space<vmem>>, %arg5: memref<1x8x8xf32, #tpu.memory_space<vmem>>, %arg6: memref<8x8xf32, #tpu.memory_space<vmem>>, %arg7: memref<8x8xf32, #tpu.memory_space<vmem>>, %arg8: memref<8x8xf32, #tpu.memory_space<vmem>>, %arg9: memref<4x8x32xf32, #tpu.memory_space<vmem>>, %arg10: memref<1x32xf32, #tpu.memory_space<vmem>>, %arg11: memref<1x32xf32, #tpu.memory_space<vmem>>, %arg12: memref<1x32xf32, #tpu.memory_space<vmem>>, %arg13: memref<1x8x32xf32, #tpu.memory_space<vmem>>, %arg14: memref<4x8x8xf32, #tpu.memory_space<vmem>>, %arg15: memref<4x8x1xf32, #tpu.memory_space<vmem>>, %arg16: memref<4x8x1xf32, #tpu.memory_space<vmem>>, %arg17: memref<4x8x8xf32, #tpu.memory_space<vmem>>) attributes {dimension_semantics = [#tpu.dimension_semantics<parallel>, #tpu.dimension_semantics<parallel>, #tpu.dimension_semantics<arbitrary>], iteration_bounds = array<i64: 2, 1, 1>, scalar_prefetch = 0 : i64, scratch_operands = 4 : i64, tpu.core_type = #tpu.core_type<tc>, window_params = [{transform_indices = @transform_0, window_bounds = array<i64: 1, 8, 32>}, {transform_indices = @transform_1, window_bounds = array<i64: 1, 8, 32>}, {transform_indices = @transform_2, window_bounds = array<i64: 1, 8, 8>}, {pipeline_mode = #tpu.pipeline_mode<synchronous>, transform_indices = @transform_3, window_bounds = array<i64: 8, 8>}, {pipeline_mode = #tpu.pipeline_mode<synchronous>, transform_indices = @transform_4, window_bounds = array<i64: 8, 8>}, {pipeline_mode = #tpu.pipeline_mode<synchronous>, transform_indices = @transform_5, window_bounds = array<i64: 8, 8>}, {pipeline_mode = #tpu.pipeline_mode<synchronous>, transform_indices = @transform_6, window_bounds = array<i64: 4, 8, 32>}, {pipeline_mode = #tpu.pipeline_mode<synchronous>, transform_indices = @transform_7, window_bounds = array<i64: 1, 32>}, {pipeline_mode = #tpu.pipeline_mode<synchronous>, transform_indices = @transform_8, window_bounds = array<i64: 1, 32>}, {pipeline_mode = #tpu.pipeline_mode<synchronous>, transform_indices = @transform_9, window_bounds = array<i64: 1, 32>}, {transform_indices = @transform_10, window_bounds = array<i64: 1, 8, 32>}]} {
    %c0_i32 = arith.constant 0 : i32
    %0 = arith.cmpi eq, %arg2, %c0_i32 : i32
    %1 = arith.extui %0 : i1 to i32
    %c0_i32_0 = arith.constant 0 : i32
    %2 = arith.cmpi ne, %1, %c0_i32_0 : i32
    scf.if %2 {
      %cst_134 = arith.constant 0xFF800000 : f32
      %188 = vector.broadcast %cst_134 : f32 to vector<4x8x1xf32>
      %c0_135 = arith.constant 0 : index
      %c0_136 = arith.constant 0 : index
      %c0_137 = arith.constant 0 : index
      %189 = vector.load %arg15[%c0_135, %c0_136, %c0_137] : memref<4x8x1xf32, #tpu.memory_space<vmem>>, vector<4x8x1xf32>
      tpu.vector_store %arg15[%c0_135, %c0_136, %c0_137], %188 {strides = array<i32>} : memref<4x8x1xf32, #tpu.memory_space<vmem>>, vector<4x8x1xf32>,
      %cst_138 = arith.constant 0.000000e+00 : f32
      %190 = vector.broadcast %cst_138 : f32 to vector<4x8x1xf32>
      %c0_139 = arith.constant 0 : index
      %c0_140 = arith.constant 0 : index
      %c0_141 = arith.constant 0 : index
      %191 = vector.load %arg16[%c0_139, %c0_140, %c0_141] : memref<4x8x1xf32, #tpu.memory_space<vmem>>, vector<4x8x1xf32>
      tpu.vector_store %arg16[%c0_139, %c0_140, %c0_141], %190 {strides = array<i32>} : memref<4x8x1xf32, #tpu.memory_space<vmem>>, vector<4x8x1xf32>,
      %cst_142 = arith.constant 0.000000e+00 : f32
      %192 = vector.broadcast %cst_142 : f32 to vector<4x8x8xf32>
      %c0_143 = arith.constant 0 : index
      %c0_144 = arith.constant 0 : index
      %c0_145 = arith.constant 0 : index
      %193 = vector.load %arg17[%c0_143, %c0_144, %c0_145] : memref<4x8x8xf32, #tpu.memory_space<vmem>>, vector<4x8x8xf32>
      tpu.vector_store %arg17[%c0_143, %c0_144, %c0_145], %192 {strides = array<i32>} : memref<4x8x8xf32, #tpu.memory_space<vmem>>, vector<4x8x8xf32>,
      %c0_146 = arith.constant 0 : index
      %c0_147 = arith.constant 0 : index
      %c0_148 = arith.constant 0 : index
      %194 = vector.load %arg3[%c0_146, %c0_147, %c0_148] : memref<1x8x32xf32, #tpu.memory_space<vmem>>, vector<1x8x32xf32>
      %195 = vector.shape_cast %194 : vector<1x8x32xf32> to vector<8x32xf32>
      %196 = vector.extract_strided_slice %195 {offsets = [0, 0], sizes = [8, 8], strides = [1, 1]} : vector<8x32xf32> to vector<8x8xf32>
      %c0_149 = arith.constant 0 : index
      %c0_150 = arith.constant 0 : index
      %197 = vector.load %arg6[%c0_149, %c0_150] : memref<8x8xf32, #tpu.memory_space<vmem>>, vector<8x8xf32>
      %cst_151 = arith.constant dense<0.000000e+00> : vector<8x8xf32>
      %198 = tpu.matmul %196, %197, %cst_151 {dimension_numbers = #tpu.dot_dimension_numbers<[1], [0], [0], [1], [0, 0, 1, 1], [], []>} : vector<8x8xf32>, vector<8x8xf32>, vector<8x8xf32> -> vector<8x8xf32>
      %c0_152 = arith.constant 0 : index
      %c0_153 = arith.constant 0 : index
      %c0_154 = arith.constant 0 : index
      %199 = vector.load %arg14[%c0_152, %c0_153, %c0_154] : memref<4x8x8xf32, #tpu.memory_space<vmem>>, vector<1x8x8xf32>
      %200 = vector.shape_cast %199 : vector<1x8x8xf32> to vector<8x8xf32>
      %201 = vector.shape_cast %198 : vector<8x8xf32> to vector<1x8x8xf32>
      tpu.vector_store %arg14[%c0_152, %c0_153, %c0_154], %201 {strides = array<i32>} : memref<4x8x8xf32, #tpu.memory_space<vmem>>, vector<1x8x8xf32>,
      %202 = vector.extract_strided_slice %195 {offsets = [0, 8], sizes = [8, 8], strides = [1, 1]} : vector<8x32xf32> to vector<8x8xf32>
      %c0_155 = arith.constant 0 : index
      %c0_156 = arith.constant 0 : index
      %203 = vector.load %arg6[%c0_155, %c0_156] : memref<8x8xf32, #tpu.memory_space<vmem>>, vector<8x8xf32>
      %cst_157 = arith.constant dense<0.000000e+00> : vector<8x8xf32>
      %204 = tpu.matmul %202, %203, %cst_157 {dimension_numbers = #tpu.dot_dimension_numbers<[1], [0], [0], [1], [0, 0, 1, 1], [], []>} : vector<8x8xf32>, vector<8x8xf32>, vector<8x8xf32> -> vector<8x8xf32>
      %c1_158 = arith.constant 1 : index
      %c0_159 = arith.constant 0 : index
      %c0_160 = arith.constant 0 : index
      %205 = vector.load %arg14[%c1_158, %c0_159, %c0_160] : memref<4x8x8xf32, #tpu.memory_space<vmem>>, vector<1x8x8xf32>
      %206 = vector.shape_cast %205 : vector<1x8x8xf32> to vector<8x8xf32>
      %207 = vector.shape_cast %204 : vector<8x8xf32> to vector<1x8x8xf32>
      tpu.vector_store %arg14[%c1_158, %c0_159, %c0_160], %207 {strides = array<i32>} : memref<4x8x8xf32, #tpu.memory_space<vmem>>, vector<1x8x8xf32>,
      %208 = vector.extract_strided_slice %195 {offsets = [0, 16], sizes = [8, 8], strides = [1, 1]} : vector<8x32xf32> to vector<8x8xf32>
      %c0_161 = arith.constant 0 : index
      %c0_162 = arith.constant 0 : index
      %209 = vector.load %arg6[%c0_161, %c0_162] : memref<8x8xf32, #tpu.memory_space<vmem>>, vector<8x8xf32>
      %cst_163 = arith.constant dense<0.000000e+00> : vector<8x8xf32>
      %210 = tpu.matmul %208, %209, %cst_163 {dimension_numbers = #tpu.dot_dimension_numbers<[1], [0], [0], [1], [0, 0, 1, 1], [], []>} : vector<8x8xf32>, vector<8x8xf32>, vector<8x8xf32> -> vector<8x8xf32>
      %c2_164 = arith.constant 2 : index
      %c0_165 = arith.constant 0 : index
      %c0_166 = arith.constant 0 : index
      %211 = vector.load %arg14[%c2_164, %c0_165, %c0_166] : memref<4x8x8xf32, #tpu.memory_space<vmem>>, vector<1x8x8xf32>
      %212 = vector.shape_cast %211 : vector<1x8x8xf32> to vector<8x8xf32>
      %213 = vector.shape_cast %210 : vector<8x8xf32> to vector<1x8x8xf32>
      tpu.vector_store %arg14[%c2_164, %c0_165, %c0_166], %213 {strides = array<i32>} : memref<4x8x8xf32, #tpu.memory_space<vmem>>, vector<1x8x8xf32>,
      %214 = vector.extract_strided_slice %195 {offsets = [0, 24], sizes = [8, 8], strides = [1, 1]} : vector<8x32xf32> to vector<8x8xf32>
      %c0_167 = arith.constant 0 : index
      %c0_168 = arith.constant 0 : index
      %215 = vector.load %arg6[%c0_167, %c0_168] : memref<8x8xf32, #tpu.memory_space<vmem>>, vector<8x8xf32>
      %cst_169 = arith.constant dense<0.000000e+00> : vector<8x8xf32>
      %216 = tpu.matmul %214, %215, %cst_169 {dimension_numbers = #tpu.dot_dimension_numbers<[1], [0], [0], [1], [0, 0, 1, 1], [], []>} : vector<8x8xf32>, vector<8x8xf32>, vector<8x8xf32> -> vector<8x8xf32>
      %c3_170 = arith.constant 3 : index
      %c0_171 = arith.constant 0 : index
      %c0_172 = arith.constant 0 : index
      %217 = vector.load %arg14[%c3_170, %c0_171, %c0_172] : memref<4x8x8xf32, #tpu.memory_space<vmem>>, vector<1x8x8xf32>
      %218 = vector.shape_cast %217 : vector<1x8x8xf32> to vector<8x8xf32>
      %219 = vector.shape_cast %216 : vector<8x8xf32> to vector<1x8x8xf32>
      tpu.vector_store %arg14[%c3_170, %c0_171, %c0_172], %219 {strides = array<i32>} : memref<4x8x8xf32, #tpu.memory_space<vmem>>, vector<1x8x8xf32>,
    } else {
    }
    %c0 = arith.constant 0 : index
    %c0_1 = arith.constant 0 : index
    %c0_2 = arith.constant 0 : index
    %3 = vector.load %arg5[%c0, %c0_1, %c0_2] : memref<1x8x8xf32, #tpu.memory_space<vmem>>, vector<1x8x8xf32>
    %4 = vector.shape_cast %3 : vector<1x8x8xf32> to vector<8x8xf32>
    %c8_i32 = arith.constant 8 : i32
    %5 = arith.muli %arg2, %c8_i32 : i32
    %6 = tpu.iota {dimensions = array<i32: 1>} : vector<1x8xi32>
    %7 = vector.broadcast %5 : i32 to vector<1x8xi32>
    %8 = arith.addi %7, %6 : vector<1x8xi32>
    %cst = arith.constant 0.000000e+00 : f32
    %9 = vector.broadcast %cst : f32 to vector<8x8xf32>
    %10 = arith.cmpf one, %4, %9 : vector<8x8xf32>
    %c8_i32_3 = arith.constant 8 : i32
    %11 = vector.broadcast %c8_i32_3 : i32 to vector<1x8xi32>
    %12 = arith.cmpi slt, %8, %11 : vector<1x8xi32>
    %13 = vector.broadcast %12 : vector<1x8xi1> to vector<8x8xi1>
    %14 = arith.andi %10, %13 : vector<8x8xi1>
    %c0_4 = arith.constant 0 : index
    %c0_5 = arith.constant 0 : index
    %c0_6 = arith.constant 0 : index
    %15 = vector.load %arg4[%c0_4, %c0_5, %c0_6] : memref<1x8x32xf32, #tpu.memory_space<vmem>>, vector<1x8x32xf32>
    %16 = vector.shape_cast %15 : vector<1x8x32xf32> to vector<8x32xf32>
    %17 = vector.extract_strided_slice %16 {offsets = [0, 0], sizes = [8, 8], strides = [1, 1]} : vector<8x32xf32> to vector<8x8xf32>
    %c0_7 = arith.constant 0 : index
    %c0_8 = arith.constant 0 : index
    %18 = vector.load %arg7[%c0_7, %c0_8] : memref<8x8xf32, #tpu.memory_space<vmem>>, vector<8x8xf32>
    %cst_9 = arith.constant dense<0.000000e+00> : vector<8x8xf32>
    %19 = tpu.matmul %17, %18, %cst_9 {dimension_numbers = #tpu.dot_dimension_numbers<[1], [0], [0], [1], [0, 0, 1, 1], [], []>} : vector<8x8xf32>, vector<8x8xf32>, vector<8x8xf32> -> vector<8x8xf32>
    %20 = vector.extract_strided_slice %16 {offsets = [0, 0], sizes = [8, 8], strides = [1, 1]} : vector<8x32xf32> to vector<8x8xf32>
    %c0_10 = arith.constant 0 : index
    %c0_11 = arith.constant 0 : index
    %21 = vector.load %arg8[%c0_10, %c0_11] : memref<8x8xf32, #tpu.memory_space<vmem>>, vector<8x8xf32>
    %cst_12 = arith.constant dense<0.000000e+00> : vector<8x8xf32>
    %22 = tpu.matmul %20, %21, %cst_12 {dimension_numbers = #tpu.dot_dimension_numbers<[1], [0], [0], [1], [0, 0, 1, 1], [], []>} : vector<8x8xf32>, vector<8x8xf32>, vector<8x8xf32> -> vector<8x8xf32>
    %c0_13 = arith.constant 0 : index
    %c0_14 = arith.constant 0 : index
    %c0_15 = arith.constant 0 : index
    %23 = vector.load %arg14[%c0_13, %c0_14, %c0_15] : memref<4x8x8xf32, #tpu.memory_space<vmem>>, vector<1x8x8xf32>
    %24 = vector.shape_cast %23 : vector<1x8x8xf32> to vector<8x8xf32>
    %cst_16 = arith.constant dense<0.000000e+00> : vector<8x8xf32>
    %25 = tpu.matmul %24, %19, %cst_16 {dimension_numbers = #tpu.dot_dimension_numbers<[1], [1], [0], [0], [0, 0, 1, 0], [], []>} : vector<8x8xf32>, vector<8x8xf32>, vector<8x8xf32> -> vector<8x8xf32>
    %cst_17 = arith.constant -1.000000e+20 : f32
    %26 = vector.broadcast %cst_17 : f32 to vector<8x8xf32>
    %27 = arith.select %14, %25, %26 : vector<8x8xi1>, vector<8x8xf32>
    %c0_18 = arith.constant 0 : index
    %c0_19 = arith.constant 0 : index
    %c0_20 = arith.constant 0 : index
    %28 = vector.load %arg15[%c0_18, %c0_19, %c0_20] : memref<4x8x1xf32, #tpu.memory_space<vmem>>, vector<1x8x1xf32>
    %29 = vector.shape_cast %28 : vector<1x8x1xf32> to vector<8x1xf32>
    %cst_21 = arith.constant dense<0xFF800000> : vector<8xf32>
    %30 = vector.multi_reduction <maximumf>, %27, %cst_21 [1] : vector<8x8xf32> to vector<8xf32>
    %31 = vector.shape_cast %30 : vector<8xf32> to vector<8x1xf32>
    %32 = arith.maximumf %29, %31 : vector<8x1xf32>
    %33 = arith.subf %29, %32 : vector<8x1xf32>
    %34 = math.exp %33 : vector<8x1xf32>
    %35 = vector.broadcast %32 : vector<8x1xf32> to vector<8x8xf32>
    %36 = arith.subf %27, %35 : vector<8x8xf32>
    %37 = math.exp %36 : vector<8x8xf32>
    %c0_22 = arith.constant 0 : index
    %c0_23 = arith.constant 0 : index
    %c0_24 = arith.constant 0 : index
    %38 = vector.load %arg16[%c0_22, %c0_23, %c0_24] : memref<4x8x1xf32, #tpu.memory_space<vmem>>, vector<1x8x1xf32>
    %39 = vector.shape_cast %38 : vector<1x8x1xf32> to vector<8x1xf32>
    %40 = arith.mulf %34, %39 : vector<8x1xf32>
    %cst_25 = arith.constant dense<0.000000e+00> : vector<8xf32>
    %41 = vector.multi_reduction <add>, %37, %cst_25 [1] : vector<8x8xf32> to vector<8xf32>
    %42 = vector.shape_cast %41 : vector<8xf32> to vector<8x1xf32>
    %43 = arith.addf %40, %42 : vector<8x1xf32>
    %c0_26 = arith.constant 0 : index
    %c0_27 = arith.constant 0 : index
    %c0_28 = arith.constant 0 : index
    %44 = vector.load %arg16[%c0_26, %c0_27, %c0_28] : memref<4x8x1xf32, #tpu.memory_space<vmem>>, vector<1x8x1xf32>
    %45 = vector.shape_cast %44 : vector<1x8x1xf32> to vector<8x1xf32>
    %46 = vector.shape_cast %43 : vector<8x1xf32> to vector<1x8x1xf32>
    tpu.vector_store %arg16[%c0_26, %c0_27, %c0_28], %46 {strides = array<i32>} : memref<4x8x1xf32, #tpu.memory_space<vmem>>, vector<1x8x1xf32>,
    %c0_29 = arith.constant 0 : index
    %c0_30 = arith.constant 0 : index
    %c0_31 = arith.constant 0 : index
    %47 = vector.load %arg17[%c0_29, %c0_30, %c0_31] : memref<4x8x8xf32, #tpu.memory_space<vmem>>, vector<1x8x8xf32>
    %48 = vector.shape_cast %47 : vector<1x8x8xf32> to vector<8x8xf32>
    %49 = vector.broadcast %34 : vector<8x1xf32> to vector<8x8xf32>
    %50 = arith.mulf %49, %48 : vector<8x8xf32>
    %cst_32 = arith.constant dense<0.000000e+00> : vector<8x8xf32>
    %51 = tpu.matmul %37, %22, %cst_32 {dimension_numbers = #tpu.dot_dimension_numbers<[1], [0], [0], [1], [0, 0, 1, 1], [], []>} : vector<8x8xf32>, vector<8x8xf32>, vector<8x8xf32> -> vector<8x8xf32>
    %52 = arith.addf %50, %51 : vector<8x8xf32>
    %c0_33 = arith.constant 0 : index
    %c0_34 = arith.constant 0 : index
    %c0_35 = arith.constant 0 : index
    %53 = vector.load %arg17[%c0_33, %c0_34, %c0_35] : memref<4x8x8xf32, #tpu.memory_space<vmem>>, vector<1x8x8xf32>
    %54 = vector.shape_cast %53 : vector<1x8x8xf32> to vector<8x8xf32>
    %55 = vector.shape_cast %52 : vector<8x8xf32> to vector<1x8x8xf32>
    tpu.vector_store %arg17[%c0_33, %c0_34, %c0_35], %55 {strides = array<i32>} : memref<4x8x8xf32, #tpu.memory_space<vmem>>, vector<1x8x8xf32>,
    %c0_36 = arith.constant 0 : index
    %c0_37 = arith.constant 0 : index
    %c0_38 = arith.constant 0 : index
    %56 = vector.load %arg15[%c0_36, %c0_37, %c0_38] : memref<4x8x1xf32, #tpu.memory_space<vmem>>, vector<1x8x1xf32>
    %57 = vector.shape_cast %56 : vector<1x8x1xf32> to vector<8x1xf32>
    %58 = vector.shape_cast %32 : vector<8x1xf32> to vector<1x8x1xf32>
    tpu.vector_store %arg15[%c0_36, %c0_37, %c0_38], %58 {strides = array<i32>} : memref<4x8x1xf32, #tpu.memory_space<vmem>>, vector<1x8x1xf32>,
    %59 = vector.extract_strided_slice %16 {offsets = [0, 8], sizes = [8, 8], strides = [1, 1]} : vector<8x32xf32> to vector<8x8xf32>
    %c0_39 = arith.constant 0 : index
    %c0_40 = arith.constant 0 : index
    %60 = vector.load %arg7[%c0_39, %c0_40] : memref<8x8xf32, #tpu.memory_space<vmem>>, vector<8x8xf32>
    %cst_41 = arith.constant dense<0.000000e+00> : vector<8x8xf32>
    %61 = tpu.matmul %59, %60, %cst_41 {dimension_numbers = #tpu.dot_dimension_numbers<[1], [0], [0], [1], [0, 0, 1, 1], [], []>} : vector<8x8xf32>, vector<8x8xf32>, vector<8x8xf32> -> vector<8x8xf32>
    %62 = vector.extract_strided_slice %16 {offsets = [0, 8], sizes = [8, 8], strides = [1, 1]} : vector<8x32xf32> to vector<8x8xf32>
    %c0_42 = arith.constant 0 : index
    %c0_43 = arith.constant 0 : index
    %63 = vector.load %arg8[%c0_42, %c0_43] : memref<8x8xf32, #tpu.memory_space<vmem>>, vector<8x8xf32>
    %cst_44 = arith.constant dense<0.000000e+00> : vector<8x8xf32>
    %64 = tpu.matmul %62, %63, %cst_44 {dimension_numbers = #tpu.dot_dimension_numbers<[1], [0], [0], [1], [0, 0, 1, 1], [], []>} : vector<8x8xf32>, vector<8x8xf32>, vector<8x8xf32> -> vector<8x8xf32>
    %c1 = arith.constant 1 : index
    %c0_45 = arith.constant 0 : index
    %c0_46 = arith.constant 0 : index
    %65 = vector.load %arg14[%c1, %c0_45, %c0_46] : memref<4x8x8xf32, #tpu.memory_space<vmem>>, vector<1x8x8xf32>
    %66 = vector.shape_cast %65 : vector<1x8x8xf32> to vector<8x8xf32>
    %cst_47 = arith.constant dense<0.000000e+00> : vector<8x8xf32>
    %67 = tpu.matmul %66, %61, %cst_47 {dimension_numbers = #tpu.dot_dimension_numbers<[1], [1], [0], [0], [0, 0, 1, 0], [], []>} : vector<8x8xf32>, vector<8x8xf32>, vector<8x8xf32> -> vector<8x8xf32>
    %cst_48 = arith.constant -1.000000e+20 : f32
    %68 = vector.broadcast %cst_48 : f32 to vector<8x8xf32>
    %69 = arith.select %14, %67, %68 : vector<8x8xi1>, vector<8x8xf32>
    %c1_49 = arith.constant 1 : index
    %c0_50 = arith.constant 0 : index
    %c0_51 = arith.constant 0 : index
    %70 = vector.load %arg15[%c1_49, %c0_50, %c0_51] : memref<4x8x1xf32, #tpu.memory_space<vmem>>, vector<1x8x1xf32>
    %71 = vector.shape_cast %70 : vector<1x8x1xf32> to vector<8x1xf32>
    %cst_52 = arith.constant dense<0xFF800000> : vector<8xf32>
    %72 = vector.multi_reduction <maximumf>, %69, %cst_52 [1] : vector<8x8xf32> to vector<8xf32>
    %73 = vector.shape_cast %72 : vector<8xf32> to vector<8x1xf32>
    %74 = arith.maximumf %71, %73 : vector<8x1xf32>
    %75 = arith.subf %71, %74 : vector<8x1xf32>
    %76 = math.exp %75 : vector<8x1xf32>
    %77 = vector.broadcast %74 : vector<8x1xf32> to vector<8x8xf32>
    %78 = arith.subf %69, %77 : vector<8x8xf32>
    %79 = math.exp %78 : vector<8x8xf32>
    %c1_53 = arith.constant 1 : index
    %c0_54 = arith.constant 0 : index
    %c0_55 = arith.constant 0 : index
    %80 = vector.load %arg16[%c1_53, %c0_54, %c0_55] : memref<4x8x1xf32, #tpu.memory_space<vmem>>, vector<1x8x1xf32>
    %81 = vector.shape_cast %80 : vector<1x8x1xf32> to vector<8x1xf32>
    %82 = arith.mulf %76, %81 : vector<8x1xf32>
    %cst_56 = arith.constant dense<0.000000e+00> : vector<8xf32>
    %83 = vector.multi_reduction <add>, %79, %cst_56 [1] : vector<8x8xf32> to vector<8xf32>
    %84 = vector.shape_cast %83 : vector<8xf32> to vector<8x1xf32>
    %85 = arith.addf %82, %84 : vector<8x1xf32>
    %c1_57 = arith.constant 1 : index
    %c0_58 = arith.constant 0 : index
    %c0_59 = arith.constant 0 : index
    %86 = vector.load %arg16[%c1_57, %c0_58, %c0_59] : memref<4x8x1xf32, #tpu.memory_space<vmem>>, vector<1x8x1xf32>
    %87 = vector.shape_cast %86 : vector<1x8x1xf32> to vector<8x1xf32>
    %88 = vector.shape_cast %85 : vector<8x1xf32> to vector<1x8x1xf32>
    tpu.vector_store %arg16[%c1_57, %c0_58, %c0_59], %88 {strides = array<i32>} : memref<4x8x1xf32, #tpu.memory_space<vmem>>, vector<1x8x1xf32>,
    %c1_60 = arith.constant 1 : index
    %c0_61 = arith.constant 0 : index
    %c0_62 = arith.constant 0 : index
    %89 = vector.load %arg17[%c1_60, %c0_61, %c0_62] : memref<4x8x8xf32, #tpu.memory_space<vmem>>, vector<1x8x8xf32>
    %90 = vector.shape_cast %89 : vector<1x8x8xf32> to vector<8x8xf32>
    %91 = vector.broadcast %76 : vector<8x1xf32> to vector<8x8xf32>
    %92 = arith.mulf %91, %90 : vector<8x8xf32>
    %cst_63 = arith.constant dense<0.000000e+00> : vector<8x8xf32>
    %93 = tpu.matmul %79, %64, %cst_63 {dimension_numbers = #tpu.dot_dimension_numbers<[1], [0], [0], [1], [0, 0, 1, 1], [], []>} : vector<8x8xf32>, vector<8x8xf32>, vector<8x8xf32> -> vector<8x8xf32>
    %94 = arith.addf %92, %93 : vector<8x8xf32>
    %c1_64 = arith.constant 1 : index
    %c0_65 = arith.constant 0 : index
    %c0_66 = arith.constant 0 : index
    %95 = vector.load %arg17[%c1_64, %c0_65, %c0_66] : memref<4x8x8xf32, #tpu.memory_space<vmem>>, vector<1x8x8xf32>
    %96 = vector.shape_cast %95 : vector<1x8x8xf32> to vector<8x8xf32>
    %97 = vector.shape_cast %94 : vector<8x8xf32> to vector<1x8x8xf32>
    tpu.vector_store %arg17[%c1_64, %c0_65, %c0_66], %97 {strides = array<i32>} : memref<4x8x8xf32, #tpu.memory_space<vmem>>, vector<1x8x8xf32>,
    %c1_67 = arith.constant 1 : index
    %c0_68 = arith.constant 0 : index
    %c0_69 = arith.constant 0 : index
    %98 = vector.load %arg15[%c1_67, %c0_68, %c0_69] : memref<4x8x1xf32, #tpu.memory_space<vmem>>, vector<1x8x1xf32>
    %99 = vector.shape_cast %98 : vector<1x8x1xf32> to vector<8x1xf32>
    %100 = vector.shape_cast %74 : vector<8x1xf32> to vector<1x8x1xf32>
    tpu.vector_store %arg15[%c1_67, %c0_68, %c0_69], %100 {strides = array<i32>} : memref<4x8x1xf32, #tpu.memory_space<vmem>>, vector<1x8x1xf32>,
    %101 = vector.extract_strided_slice %16 {offsets = [0, 16], sizes = [8, 8], strides = [1, 1]} : vector<8x32xf32> to vector<8x8xf32>
    %c0_70 = arith.constant 0 : index
    %c0_71 = arith.constant 0 : index
    %102 = vector.load %arg7[%c0_70, %c0_71] : memref<8x8xf32, #tpu.memory_space<vmem>>, vector<8x8xf32>
    %cst_72 = arith.constant dense<0.000000e+00> : vector<8x8xf32>
    %103 = tpu.matmul %101, %102, %cst_72 {dimension_numbers = #tpu.dot_dimension_numbers<[1], [0], [0], [1], [0, 0, 1, 1], [], []>} : vector<8x8xf32>, vector<8x8xf32>, vector<8x8xf32> -> vector<8x8xf32>
    %104 = vector.extract_strided_slice %16 {offsets = [0, 16], sizes = [8, 8], strides = [1, 1]} : vector<8x32xf32> to vector<8x8xf32>
    %c0_73 = arith.constant 0 : index
    %c0_74 = arith.constant 0 : index
    %105 = vector.load %arg8[%c0_73, %c0_74] : memref<8x8xf32, #tpu.memory_space<vmem>>, vector<8x8xf32>
    %cst_75 = arith.constant dense<0.000000e+00> : vector<8x8xf32>
    %106 = tpu.matmul %104, %105, %cst_75 {dimension_numbers = #tpu.dot_dimension_numbers<[1], [0], [0], [1], [0, 0, 1, 1], [], []>} : vector<8x8xf32>, vector<8x8xf32>, vector<8x8xf32> -> vector<8x8xf32>
    %c2 = arith.constant 2 : index
    %c0_76 = arith.constant 0 : index
    %c0_77 = arith.constant 0 : index
    %107 = vector.load %arg14[%c2, %c0_76, %c0_77] : memref<4x8x8xf32, #tpu.memory_space<vmem>>, vector<1x8x8xf32>
    %108 = vector.shape_cast %107 : vector<1x8x8xf32> to vector<8x8xf32>
    %cst_78 = arith.constant dense<0.000000e+00> : vector<8x8xf32>
    %109 = tpu.matmul %108, %103, %cst_78 {dimension_numbers = #tpu.dot_dimension_numbers<[1], [1], [0], [0], [0, 0, 1, 0], [], []>} : vector<8x8xf32>, vector<8x8xf32>, vector<8x8xf32> -> vector<8x8xf32>
    %cst_79 = arith.constant -1.000000e+20 : f32
    %110 = vector.broadcast %cst_79 : f32 to vector<8x8xf32>
    %111 = arith.select %14, %109, %110 : vector<8x8xi1>, vector<8x8xf32>
    %c2_80 = arith.constant 2 : index
    %c0_81 = arith.constant 0 : index
    %c0_82 = arith.constant 0 : index
    %112 = vector.load %arg15[%c2_80, %c0_81, %c0_82] : memref<4x8x1xf32, #tpu.memory_space<vmem>>, vector<1x8x1xf32>
    %113 = vector.shape_cast %112 : vector<1x8x1xf32> to vector<8x1xf32>
    %cst_83 = arith.constant dense<0xFF800000> : vector<8xf32>
    %114 = vector.multi_reduction <maximumf>, %111, %cst_83 [1] : vector<8x8xf32> to vector<8xf32>
    %115 = vector.shape_cast %114 : vector<8xf32> to vector<8x1xf32>
    %116 = arith.maximumf %113, %115 : vector<8x1xf32>
    %117 = arith.subf %113, %116 : vector<8x1xf32>
    %118 = math.exp %117 : vector<8x1xf32>
    %119 = vector.broadcast %116 : vector<8x1xf32> to vector<8x8xf32>
    %120 = arith.subf %111, %119 : vector<8x8xf32>
    %121 = math.exp %120 : vector<8x8xf32>
    %c2_84 = arith.constant 2 : index
    %c0_85 = arith.constant 0 : index
    %c0_86 = arith.constant 0 : index
    %122 = vector.load %arg16[%c2_84, %c0_85, %c0_86] : memref<4x8x1xf32, #tpu.memory_space<vmem>>, vector<1x8x1xf32>
    %123 = vector.shape_cast %122 : vector<1x8x1xf32> to vector<8x1xf32>
    %124 = arith.mulf %118, %123 : vector<8x1xf32>
    %cst_87 = arith.constant dense<0.000000e+00> : vector<8xf32>
    %125 = vector.multi_reduction <add>, %121, %cst_87 [1] : vector<8x8xf32> to vector<8xf32>
    %126 = vector.shape_cast %125 : vector<8xf32> to vector<8x1xf32>
    %127 = arith.addf %124, %126 : vector<8x1xf32>
    %c2_88 = arith.constant 2 : index
    %c0_89 = arith.constant 0 : index
    %c0_90 = arith.constant 0 : index
    %128 = vector.load %arg16[%c2_88, %c0_89, %c0_90] : memref<4x8x1xf32, #tpu.memory_space<vmem>>, vector<1x8x1xf32>
    %129 = vector.shape_cast %128 : vector<1x8x1xf32> to vector<8x1xf32>
    %130 = vector.shape_cast %127 : vector<8x1xf32> to vector<1x8x1xf32>
    tpu.vector_store %arg16[%c2_88, %c0_89, %c0_90], %130 {strides = array<i32>} : memref<4x8x1xf32, #tpu.memory_space<vmem>>, vector<1x8x1xf32>,
    %c2_91 = arith.constant 2 : index
    %c0_92 = arith.constant 0 : index
    %c0_93 = arith.constant 0 : index
    %131 = vector.load %arg17[%c2_91, %c0_92, %c0_93] : memref<4x8x8xf32, #tpu.memory_space<vmem>>, vector<1x8x8xf32>
    %132 = vector.shape_cast %131 : vector<1x8x8xf32> to vector<8x8xf32>
    %133 = vector.broadcast %118 : vector<8x1xf32> to vector<8x8xf32>
    %134 = arith.mulf %133, %132 : vector<8x8xf32>
    %cst_94 = arith.constant dense<0.000000e+00> : vector<8x8xf32>
    %135 = tpu.matmul %121, %106, %cst_94 {dimension_numbers = #tpu.dot_dimension_numbers<[1], [0], [0], [1], [0, 0, 1, 1], [], []>} : vector<8x8xf32>, vector<8x8xf32>, vector<8x8xf32> -> vector<8x8xf32>
    %136 = arith.addf %134, %135 : vector<8x8xf32>
    %c2_95 = arith.constant 2 : index
    %c0_96 = arith.constant 0 : index
    %c0_97 = arith.constant 0 : index
    %137 = vector.load %arg17[%c2_95, %c0_96, %c0_97] : memref<4x8x8xf32, #tpu.memory_space<vmem>>, vector<1x8x8xf32>
    %138 = vector.shape_cast %137 : vector<1x8x8xf32> to vector<8x8xf32>
    %139 = vector.shape_cast %136 : vector<8x8xf32> to vector<1x8x8xf32>
    tpu.vector_store %arg17[%c2_95, %c0_96, %c0_97], %139 {strides = array<i32>} : memref<4x8x8xf32, #tpu.memory_space<vmem>>, vector<1x8x8xf32>,
    %c2_98 = arith.constant 2 : index
    %c0_99 = arith.constant 0 : index
    %c0_100 = arith.constant 0 : index
    %140 = vector.load %arg15[%c2_98, %c0_99, %c0_100] : memref<4x8x1xf32, #tpu.memory_space<vmem>>, vector<1x8x1xf32>
    %141 = vector.shape_cast %140 : vector<1x8x1xf32> to vector<8x1xf32>
    %142 = vector.shape_cast %116 : vector<8x1xf32> to vector<1x8x1xf32>
    tpu.vector_store %arg15[%c2_98, %c0_99, %c0_100], %142 {strides = array<i32>} : memref<4x8x1xf32, #tpu.memory_space<vmem>>, vector<1x8x1xf32>,
    %143 = vector.extract_strided_slice %16 {offsets = [0, 24], sizes = [8, 8], strides = [1, 1]} : vector<8x32xf32> to vector<8x8xf32>
    %c0_101 = arith.constant 0 : index
    %c0_102 = arith.constant 0 : index
    %144 = vector.load %arg7[%c0_101, %c0_102] : memref<8x8xf32, #tpu.memory_space<vmem>>, vector<8x8xf32>
    %cst_103 = arith.constant dense<0.000000e+00> : vector<8x8xf32>
    %145 = tpu.matmul %143, %144, %cst_103 {dimension_numbers = #tpu.dot_dimension_numbers<[1], [0], [0], [1], [0, 0, 1, 1], [], []>} : vector<8x8xf32>, vector<8x8xf32>, vector<8x8xf32> -> vector<8x8xf32>
    %146 = vector.extract_strided_slice %16 {offsets = [0, 24], sizes = [8, 8], strides = [1, 1]} : vector<8x32xf32> to vector<8x8xf32>
    %c0_104 = arith.constant 0 : index
    %c0_105 = arith.constant 0 : index
    %147 = vector.load %arg8[%c0_104, %c0_105] : memref<8x8xf32, #tpu.memory_space<vmem>>, vector<8x8xf32>
    %cst_106 = arith.constant dense<0.000000e+00> : vector<8x8xf32>
    %148 = tpu.matmul %146, %147, %cst_106 {dimension_numbers = #tpu.dot_dimension_numbers<[1], [0], [0], [1], [0, 0, 1, 1], [], []>} : vector<8x8xf32>, vector<8x8xf32>, vector<8x8xf32> -> vector<8x8xf32>
    %c3 = arith.constant 3 : index
    %c0_107 = arith.constant 0 : index
    %c0_108 = arith.constant 0 : index
    %149 = vector.load %arg14[%c3, %c0_107, %c0_108] : memref<4x8x8xf32, #tpu.memory_space<vmem>>, vector<1x8x8xf32>
    %150 = vector.shape_cast %149 : vector<1x8x8xf32> to vector<8x8xf32>
    %cst_109 = arith.constant dense<0.000000e+00> : vector<8x8xf32>
    %151 = tpu.matmul %150, %145, %cst_109 {dimension_numbers = #tpu.dot_dimension_numbers<[1], [1], [0], [0], [0, 0, 1, 0], [], []>} : vector<8x8xf32>, vector<8x8xf32>, vector<8x8xf32> -> vector<8x8xf32>
    %cst_110 = arith.constant -1.000000e+20 : f32
    %152 = vector.broadcast %cst_110 : f32 to vector<8x8xf32>
    %153 = arith.select %14, %151, %152 : vector<8x8xi1>, vector<8x8xf32>
    %c3_111 = arith.constant 3 : index
    %c0_112 = arith.constant 0 : index
    %c0_113 = arith.constant 0 : index
    %154 = vector.load %arg15[%c3_111, %c0_112, %c0_113] : memref<4x8x1xf32, #tpu.memory_space<vmem>>, vector<1x8x1xf32>
    %155 = vector.shape_cast %154 : vector<1x8x1xf32> to vector<8x1xf32>
    %cst_114 = arith.constant dense<0xFF800000> : vector<8xf32>
    %156 = vector.multi_reduction <maximumf>, %153, %cst_114 [1] : vector<8x8xf32> to vector<8xf32>
    %157 = vector.shape_cast %156 : vector<8xf32> to vector<8x1xf32>
    %158 = arith.maximumf %155, %157 : vector<8x1xf32>
    %159 = arith.subf %155, %158 : vector<8x1xf32>
    %160 = math.exp %159 : vector<8x1xf32>
    %161 = vector.broadcast %158 : vector<8x1xf32> to vector<8x8xf32>
    %162 = arith.subf %153, %161 : vector<8x8xf32>
    %163 = math.exp %162 : vector<8x8xf32>
    %c3_115 = arith.constant 3 : index
    %c0_116 = arith.constant 0 : index
    %c0_117 = arith.constant 0 : index
    %164 = vector.load %arg16[%c3_115, %c0_116, %c0_117] : memref<4x8x1xf32, #tpu.memory_space<vmem>>, vector<1x8x1xf32>
    %165 = vector.shape_cast %164 : vector<1x8x1xf32> to vector<8x1xf32>
    %166 = arith.mulf %160, %165 : vector<8x1xf32>
    %cst_118 = arith.constant dense<0.000000e+00> : vector<8xf32>
    %167 = vector.multi_reduction <add>, %163, %cst_118 [1] : vector<8x8xf32> to vector<8xf32>
    %168 = vector.shape_cast %167 : vector<8xf32> to vector<8x1xf32>
    %169 = arith.addf %166, %168 : vector<8x1xf32>
    %c3_119 = arith.constant 3 : index
    %c0_120 = arith.constant 0 : index
    %c0_121 = arith.constant 0 : index
    %170 = vector.load %arg16[%c3_119, %c0_120, %c0_121] : memref<4x8x1xf32, #tpu.memory_space<vmem>>, vector<1x8x1xf32>
    %171 = vector.shape_cast %170 : vector<1x8x1xf32> to vector<8x1xf32>
    %172 = vector.shape_cast %169 : vector<8x1xf32> to vector<1x8x1xf32>
    tpu.vector_store %arg16[%c3_119, %c0_120, %c0_121], %172 {strides = array<i32>} : memref<4x8x1xf32, #tpu.memory_space<vmem>>, vector<1x8x1xf32>,
    %c3_122 = arith.constant 3 : index
    %c0_123 = arith.constant 0 : index
    %c0_124 = arith.constant 0 : index
    %173 = vector.load %arg17[%c3_122, %c0_123, %c0_124] : memref<4x8x8xf32, #tpu.memory_space<vmem>>, vector<1x8x8xf32>
    %174 = vector.shape_cast %173 : vector<1x8x8xf32> to vector<8x8xf32>
    %175 = vector.broadcast %160 : vector<8x1xf32> to vector<8x8xf32>
    %176 = arith.mulf %175, %174 : vector<8x8xf32>
    %cst_125 = arith.constant dense<0.000000e+00> : vector<8x8xf32>
    %177 = tpu.matmul %163, %148, %cst_125 {dimension_numbers = #tpu.dot_dimension_numbers<[1], [0], [0], [1], [0, 0, 1, 1], [], []>} : vector<8x8xf32>, vector<8x8xf32>, vector<8x8xf32> -> vector<8x8xf32>
    %178 = arith.addf %176, %177 : vector<8x8xf32>
    %c3_126 = arith.constant 3 : index
    %c0_127 = arith.constant 0 : index
    %c0_128 = arith.constant 0 : index
    %179 = vector.load %arg17[%c3_126, %c0_127, %c0_128] : memref<4x8x8xf32, #tpu.memory_space<vmem>>, vector<1x8x8xf32>
    %180 = vector.shape_cast %179 : vector<1x8x8xf32> to vector<8x8xf32>
    %181 = vector.shape_cast %178 : vector<8x8xf32> to vector<1x8x8xf32>
    tpu.vector_store %arg17[%c3_126, %c0_127, %c0_128], %181 {strides = array<i32>} : memref<4x8x8xf32, #tpu.memory_space<vmem>>, vector<1x8x8xf32>,
    %c3_129 = arith.constant 3 : index
    %c0_130 = arith.constant 0 : index
    %c0_131 = arith.constant 0 : index
    %182 = vector.load %arg15[%c3_129, %c0_130, %c0_131] : memref<4x8x1xf32, #tpu.memory_space<vmem>>, vector<1x8x1xf32>
    %183 = vector.shape_cast %182 : vector<1x8x1xf32> to vector<8x1xf32>
    %184 = vector.shape_cast %158 : vector<8x1xf32> to vector<1x8x1xf32>
    tpu.vector_store %arg15[%c3_129, %c0_130, %c0_131], %184 {strides = array<i32>} : memref<4x8x1xf32, #tpu.memory_space<vmem>>, vector<1x8x1xf32>,
    %c0_i32_132 = arith.constant 0 : i32
    %185 = arith.cmpi eq, %arg2, %c0_i32_132 : i32
    %186 = arith.extui %185 : i1 to i32
    %c0_i32_133 = arith.constant 0 : i32
    %187 = arith.cmpi ne, %186, %c0_i32_133 : i32
    scf.if %187 {
      %cst_134 = arith.constant 0.000000e+00 : f32
      %188 = vector.broadcast %cst_134 : f32 to vector<8x32xf32>
      %c0_135 = arith.constant 0 : index
      %c0_136 = arith.constant 0 : index
      %c0_137 = arith.constant 0 : index
      %189 = vector.load %arg17[%c0_135, %c0_136, %c0_137] : memref<4x8x8xf32, #tpu.memory_space<vmem>>, vector<1x8x8xf32>
      %190 = vector.shape_cast %189 : vector<1x8x8xf32> to vector<8x8xf32>
      %c0_138 = arith.constant 0 : index
      %c0_139 = arith.constant 0 : index
      %c0_140 = arith.constant 0 : index
      %191 = vector.load %arg16[%c0_138, %c0_139, %c0_140] : memref<4x8x1xf32, #tpu.memory_space<vmem>>, vector<1x8x1xf32>
      %192 = vector.shape_cast %191 : vector<1x8x1xf32> to vector<8x1xf32>
      %193 = tpu.reciprocal %192 {approx = true} : vector<8x1xf32> -> vector<8x1xf32>
      %194 = vector.broadcast %193 : vector<8x1xf32> to vector<8x8xf32>
      %195 = arith.mulf %190, %194 : vector<8x8xf32>
      %c0_141 = arith.constant 0 : index
      %c0_142 = arith.constant 0 : index
      %c0_143 = arith.constant 0 : index
      %196 = vector.load %arg9[%c0_141, %c0_142, %c0_143] : memref<4x8x32xf32, #tpu.memory_space<vmem>>, vector<1x8x32xf32>
      %197 = vector.shape_cast %196 : vector<1x8x32xf32> to vector<8x32xf32>
      %cst_144 = arith.constant dense<0.000000e+00> : vector<8x32xf32>
      %198 = tpu.matmul %195, %197, %cst_144 {dimension_numbers = #tpu.dot_dimension_numbers<[1], [0], [0], [1], [0, 0, 1, 1], [], []>} : vector<8x8xf32>, vector<8x32xf32>, vector<8x32xf32> -> vector<8x32xf32>
      %199 = arith.addf %188, %198 : vector<8x32xf32>
      %c1_145 = arith.constant 1 : index
      %c0_146 = arith.constant 0 : index
      %c0_147 = arith.constant 0 : index
      %200 = vector.load %arg17[%c1_145, %c0_146, %c0_147] : memref<4x8x8xf32, #tpu.memory_space<vmem>>, vector<1x8x8xf32>
      %201 = vector.shape_cast %200 : vector<1x8x8xf32> to vector<8x8xf32>
      %c1_148 = arith.constant 1 : index
      %c0_149 = arith.constant 0 : index
      %c0_150 = arith.constant 0 : index
      %202 = vector.load %arg16[%c1_148, %c0_149, %c0_150] : memref<4x8x1xf32, #tpu.memory_space<vmem>>, vector<1x8x1xf32>
      %203 = vector.shape_cast %202 : vector<1x8x1xf32> to vector<8x1xf32>
      %204 = tpu.reciprocal %203 {approx = true} : vector<8x1xf32> -> vector<8x1xf32>
      %205 = vector.broadcast %204 : vector<8x1xf32> to vector<8x8xf32>
      %206 = arith.mulf %201, %205 : vector<8x8xf32>
      %c1_151 = arith.constant 1 : index
      %c0_152 = arith.constant 0 : index
      %c0_153 = arith.constant 0 : index
      %207 = vector.load %arg9[%c1_151, %c0_152, %c0_153] : memref<4x8x32xf32, #tpu.memory_space<vmem>>, vector<1x8x32xf32>
      %208 = vector.shape_cast %207 : vector<1x8x32xf32> to vector<8x32xf32>
      %cst_154 = arith.constant dense<0.000000e+00> : vector<8x32xf32>
      %209 = tpu.matmul %206, %208, %cst_154 {dimension_numbers = #tpu.dot_dimension_numbers<[1], [0], [0], [1], [0, 0, 1, 1], [], []>} : vector<8x8xf32>, vector<8x32xf32>, vector<8x32xf32> -> vector<8x32xf32>
      %210 = arith.addf %199, %209 : vector<8x32xf32>
      %c2_155 = arith.constant 2 : index
      %c0_156 = arith.constant 0 : index
      %c0_157 = arith.constant 0 : index
      %211 = vector.load %arg17[%c2_155, %c0_156, %c0_157] : memref<4x8x8xf32, #tpu.memory_space<vmem>>, vector<1x8x8xf32>
      %212 = vector.shape_cast %211 : vector<1x8x8xf32> to vector<8x8xf32>
      %c2_158 = arith.constant 2 : index
      %c0_159 = arith.constant 0 : index
      %c0_160 = arith.constant 0 : index
      %213 = vector.load %arg16[%c2_158, %c0_159, %c0_160] : memref<4x8x1xf32, #tpu.memory_space<vmem>>, vector<1x8x1xf32>
      %214 = vector.shape_cast %213 : vector<1x8x1xf32> to vector<8x1xf32>
      %215 = tpu.reciprocal %214 {approx = true} : vector<8x1xf32> -> vector<8x1xf32>
      %216 = vector.broadcast %215 : vector<8x1xf32> to vector<8x8xf32>
      %217 = arith.mulf %212, %216 : vector<8x8xf32>
      %c2_161 = arith.constant 2 : index
      %c0_162 = arith.constant 0 : index
      %c0_163 = arith.constant 0 : index
      %218 = vector.load %arg9[%c2_161, %c0_162, %c0_163] : memref<4x8x32xf32, #tpu.memory_space<vmem>>, vector<1x8x32xf32>
      %219 = vector.shape_cast %218 : vector<1x8x32xf32> to vector<8x32xf32>
      %cst_164 = arith.constant dense<0.000000e+00> : vector<8x32xf32>
      %220 = tpu.matmul %217, %219, %cst_164 {dimension_numbers = #tpu.dot_dimension_numbers<[1], [0], [0], [1], [0, 0, 1, 1], [], []>} : vector<8x8xf32>, vector<8x32xf32>, vector<8x32xf32> -> vector<8x32xf32>
      %221 = arith.addf %210, %220 : vector<8x32xf32>
      %c3_165 = arith.constant 3 : index
      %c0_166 = arith.constant 0 : index
      %c0_167 = arith.constant 0 : index
      %222 = vector.load %arg17[%c3_165, %c0_166, %c0_167] : memref<4x8x8xf32, #tpu.memory_space<vmem>>, vector<1x8x8xf32>
      %223 = vector.shape_cast %222 : vector<1x8x8xf32> to vector<8x8xf32>
      %c3_168 = arith.constant 3 : index
      %c0_169 = arith.constant 0 : index
      %c0_170 = arith.constant 0 : index
      %224 = vector.load %arg16[%c3_168, %c0_169, %c0_170] : memref<4x8x1xf32, #tpu.memory_space<vmem>>, vector<1x8x1xf32>
      %225 = vector.shape_cast %224 : vector<1x8x1xf32> to vector<8x1xf32>
      %226 = tpu.reciprocal %225 {approx = true} : vector<8x1xf32> -> vector<8x1xf32>
      %227 = vector.broadcast %226 : vector<8x1xf32> to vector<8x8xf32>
      %228 = arith.mulf %223, %227 : vector<8x8xf32>
      %c3_171 = arith.constant 3 : index
      %c0_172 = arith.constant 0 : index
      %c0_173 = arith.constant 0 : index
      %229 = vector.load %arg9[%c3_171, %c0_172, %c0_173] : memref<4x8x32xf32, #tpu.memory_space<vmem>>, vector<1x8x32xf32>
      %230 = vector.shape_cast %229 : vector<1x8x32xf32> to vector<8x32xf32>
      %cst_174 = arith.constant dense<0.000000e+00> : vector<8x32xf32>
      %231 = tpu.matmul %228, %230, %cst_174 {dimension_numbers = #tpu.dot_dimension_numbers<[1], [0], [0], [1], [0, 0, 1, 1], [], []>} : vector<8x8xf32>, vector<8x32xf32>, vector<8x32xf32> -> vector<8x32xf32>
      %232 = arith.addf %221, %231 : vector<8x32xf32>
      %c0_175 = arith.constant 0 : index
      %c0_176 = arith.constant 0 : index
      %233 = vector.load %arg10[%c0_175, %c0_176] : memref<1x32xf32, #tpu.memory_space<vmem>>, vector<1x32xf32>
      %234 = vector.broadcast %233 : vector<1x32xf32> to vector<8x32xf32>
      %235 = arith.addf %232, %234 : vector<8x32xf32>
      %c0_177 = arith.constant 0 : index
      %c0_178 = arith.constant 0 : index
      %c0_179 = arith.constant 0 : index
      %236 = vector.load %arg3[%c0_177, %c0_178, %c0_179] : memref<1x8x32xf32, #tpu.memory_space<vmem>>, vector<1x8x32xf32>
      %237 = vector.shape_cast %236 : vector<1x8x32xf32> to vector<8x32xf32>
      %238 = arith.addf %235, %237 : vector<8x32xf32>
      %cst_180 = arith.constant dense<0.000000e+00> : vector<8xf32>
      %239 = vector.multi_reduction <add>, %238, %cst_180 [1] : vector<8x32xf32> to vector<8xf32>
      %240 = vector.shape_cast %239 : vector<8xf32> to vector<8x1xf32>
      %cst_181 = arith.constant 3.200000e+01 : f32
      %241 = vector.broadcast %cst_181 : f32 to vector<8x1xf32>
      %242 = arith.divf %240, %241 : vector<8x1xf32>
      %243 = vector.broadcast %242 : vector<8x1xf32> to vector<8x32xf32>
      %244 = arith.subf %238, %243 : vector<8x32xf32>
      %245 = arith.mulf %244, %244 : vector<8x32xf32>
      %cst_182 = arith.constant dense<0.000000e+00> : vector<8xf32>
      %246 = vector.multi_reduction <add>, %245, %cst_182 [1] : vector<8x32xf32> to vector<8xf32>
      %247 = vector.shape_cast %246 : vector<8xf32> to vector<8x1xf32>
      %cst_183 = arith.constant 3.200000e+01 : f32
      %248 = vector.broadcast %cst_183 : f32 to vector<8x1xf32>
      %249 = arith.divf %247, %248 : vector<8x1xf32>
      %cst_184 = arith.constant 9.99999974E-6 : f32
      %250 = vector.broadcast %cst_184 : f32 to vector<8x1xf32>
      %251 = arith.addf %249, %250 : vector<8x1xf32>
      %252 = math.rsqrt %251 : vector<8x1xf32>
      %253 = vector.broadcast %252 : vector<8x1xf32> to vector<8x32xf32>
      %254 = arith.mulf %244, %253 : vector<8x32xf32>
      %c0_185 = arith.constant 0 : index
      %c0_186 = arith.constant 0 : index
      %255 = vector.load %arg11[%c0_185, %c0_186] : memref<1x32xf32, #tpu.memory_space<vmem>>, vector<1x32xf32>
      %256 = vector.broadcast %255 : vector<1x32xf32> to vector<8x32xf32>
      %257 = arith.mulf %254, %256 : vector<8x32xf32>
      %c0_187 = arith.constant 0 : index
      %c0_188 = arith.constant 0 : index
      %258 = vector.load %arg12[%c0_187, %c0_188] : memref<1x32xf32, #tpu.memory_space<vmem>>, vector<1x32xf32>
      %259 = vector.broadcast %258 : vector<1x32xf32> to vector<8x32xf32>
      %260 = arith.addf %257, %259 : vector<8x32xf32>
      %c0_189 = arith.constant 0 : index
      %c0_190 = arith.constant 0 : index
      %c0_191 = arith.constant 0 : index
      %261 = vector.load %arg13[%c0_189, %c0_190, %c0_191] : memref<1x8x32xf32, #tpu.memory_space<vmem>>, vector<1x8x32xf32>
      %262 = vector.shape_cast %261 : vector<1x8x32xf32> to vector<8x32xf32>
      %263 = vector.shape_cast %260 : vector<8x32xf32> to vector<1x8x32xf32>
      tpu.vector_store %arg13[%c0_189, %c0_190, %c0_191], %263 {strides = array<i32>} : memref<1x8x32xf32, #tpu.memory_space<vmem>>, vector<1x8x32xf32>,
    } else {
    }
    return
  }
  func.func @transform_0(%arg0: i32, %arg1: i32, %arg2: i32) -> (i32, i32, i32) {
    %c0_i32 = arith.constant 0 : i32
    %c0_i32_0 = arith.constant 0 : i32
    return %arg0, %arg1, %c0_i32 : i32, i32, i32
  }
  func.func @transform_1(%arg0: i32, %arg1: i32, %arg2: i32) -> (i32, i32, i32) {
    %c0_i32 = arith.constant 0 : i32
    %c0_i32_0 = arith.constant 0 : i32
    return %arg0, %arg2, %c0_i32 : i32, i32, i32
  }
  func.func @transform_2(%arg0: i32, %arg1: i32, %arg2: i32) -> (i32, i32, i32) {
    %c0_i32 = arith.constant 0 : i32
    return %arg0, %arg1, %arg2 : i32, i32, i32
  }
  func.func @transform_3(%arg0: i32, %arg1: i32, %arg2: i32) -> (i32, i32) {
    %c0_i32 = arith.constant 0 : i32
    %c0_i32_0 = arith.constant 0 : i32
    %c0_i32_1 = arith.constant 0 : i32
    return %c0_i32, %c0_i32_0 : i32, i32
  }
  func.func @transform_4(%arg0: i32, %arg1: i32, %arg2: i32) -> (i32, i32) {
    %c0_i32 = arith.constant 0 : i32
    %c0_i32_0 = arith.constant 0 : i32
    %c0_i32_1 = arith.constant 0 : i32
    return %c0_i32, %c0_i32_0 : i32, i32
  }
  func.func @transform_5(%arg0: i32, %arg1: i32, %arg2: i32) -> (i32, i32) {
    %c0_i32 = arith.constant 0 : i32
    %c0_i32_0 = arith.constant 0 : i32
    %c0_i32_1 = arith.constant 0 : i32
    return %c0_i32, %c0_i32_0 : i32, i32
  }
  func.func @transform_6(%arg0: i32, %arg1: i32, %arg2: i32) -> (i32, i32, i32) {
    %c0_i32 = arith.constant 0 : i32
    %c0_i32_0 = arith.constant 0 : i32
    %c0_i32_1 = arith.constant 0 : i32
    %c0_i32_2 = arith.constant 0 : i32
    return %c0_i32, %c0_i32_0, %c0_i32_1 : i32, i32, i32
  }
  func.func @transform_7(%arg0: i32, %arg1: i32, %arg2: i32) -> (i32, i32) {
    %c0_i32 = arith.constant 0 : i32
    %c0_i32_0 = arith.constant 0 : i32
    %c0_i32_1 = arith.constant 0 : i32
    return %c0_i32, %c0_i32_0 : i32, i32
  }
  func.func @transform_8(%arg0: i32, %arg1: i32, %arg2: i32) -> (i32, i32) {
    %c0_i32 = arith.constant 0 : i32
    %c0_i32_0 = arith.constant 0 : i32
    %c0_i32_1 = arith.constant 0 : i32
    return %c0_i32, %c0_i32_0 : i32, i32
  }
  func.func @transform_9(%arg0: i32, %arg1: i32, %arg2: i32) -> (i32, i32) {
    %c0_i32 = arith.constant 0 : i32
    %c0_i32_0 = arith.constant 0 : i32
    %c0_i32_1 = arith.constant 0 : i32
    return %c0_i32, %c0_i32_0 : i32, i32
  }
  func.func @transform_10(%arg0: i32, %arg1: i32, %arg2: i32) -> (i32, i32, i32) {
    %c0_i32 = arith.constant 0 : i32
    %c0_i32_0 = arith.constant 0 : i32
    return %arg0, %arg1, %c0_i32 : i32, i32, i32
  }
}

</mosaic_0001>

<bundles_post_ra>
// kernel: tpu_custom_call.1
= control target key start
LH: loop header
LB: loop body
LE: loop exit
PB: predicated region body
PF: predicated region fallthrough
CT: control target
= control target key end

     0   :  { %s3910_s0 = inlined_call_operand.hbm [shape: f32[2,8,32], index: 0, kind: input, shape index: {}]   ;;  %s3911_s1 = inlined_call_operand.hbm [shape: f32[2,8,32], index: 1, kind: input, shape index: {}]   ;;  %s3912_s2 = inlined_call_operand.hbm [shape: f32[2,8,8], index: 2, kind: input, shape index: {}]   ;;  %s3913_s3 = inlined_call_operand.hbm [shape: f32[8,8], index: 3, kind: input, shape index: {}]   ;;  %s3914_s4 = inlined_call_operand.hbm [shape: f32[8,8], index: 4, kind: input, shape index: {}]   ;;  %s3915_s5 = inlined_call_operand.vmem [shape: f32[8,8], index: 5, kind: input, shape index: {}]   ;;  %s3916_s6 = inlined_call_operand.hbm [shape: f32[4,8,32], index: 6, kind: input, shape index: {}]   ;;  %s3917_s7 = inlined_call_operand.vmem [shape: f32[1,32], index: 7, kind: input, shape index: {}]   ;;  %s3918_s8 = inlined_call_operand.vmem [shape: f32[1,32], index: 8, kind: input, shape index: {}]   ;;  %s3919_s9 = inlined_call_operand.vmem [shape: f32[1,32], index: 9, kind: input, shape index: {}]   ;;  %s3920_s10 = inlined_call_operand.hbm [shape: f32[2,8,32], index: 10, kind: output, shape index: {}]  }
   0x1   :  { %3935 = sst [smem:[#allocation29_spill]] %s3911_s1 }
   0x2   :  { %3936 = sst [smem:[#allocation30_spill]] %s3913_s3 }
   0x3   :  { %3937 = sst [smem:[#allocation31_spill]] %s3914_s4 }
   0x4   :  { %3938 = sst [smem:[#allocation32_spill]] %s3918_s8 }
   0x5   :  { %3939 = sst [smem:[#allocation33_spill]] %s3919_s9 }
   0x6   :  { %3940 = sst [smem:[#allocation34_spill]] %s3920_s10 }
   0x7   :  { %15 = vsyncpa [#allocation7], 0 }
   0x8   :  { %17 = vsyncpa [#allocation7 + $0x1], 0 }
   0x9   :  { %18 = vsyncpa [#allocation10], 0 }
   0xa   :  { %20 = vsyncpa [#allocation10 + $0x1], 0 }
   0xb   :  { %21 = vsyncpa [#allocation13], 0 }
   0xc   :  { %22 = vsyncpa [#allocation16], 0 }
   0xd   :  { %23 = vsyncpa [#allocation8], 0 }
   0xe   :  { %25 = vsyncpa [#allocation8 + $0x1], 0  ;;  %s3435_s13 = smov 0   ;;  %s3437_s14 = smov 0  }
   0xf   :  { %s3439_s15 = smov 0   ;;  %s3441_s16 = smov 0  }
  0x10   :  { %s3443_s17 = smov 0   ;;  %s3445_s18 = smov 0  }
  0x11 LB: > { %3941 = sst [smem:[#allocation23_spill]] %s3342_s13  ;;  %s3466_s19 = sadd.s32 4294967295, %s3362_s18   ;;  %s3362_s18 = sphi %s3445_s18, %s31_s18   ;;  %s3358_s17 = sphi %s3443_s17, %s3985_s17   ;;  %s3354_s16 = sphi %s3441_s16, %s3980_s16   ;;  %s3350_s15 = sphi %s3439_s15, %s3984_s15   ;;  %s3346_s14 = sphi %s3437_s14, %s3983_s14   ;;  %s3342_s13 = sphi %s3435_s13, %s3982_s13  }
  0x12   : > { %3942 = sst [smem:[#allocation24_spill]] %s3358_s17  ;;  %s2745_s20 = sadd.s32 4294967294, %s3362_s18  }
  0x13   : > { %3943 = sst [smem:[#allocation25_spill]] %s3362_s18  ;;  %p72_p0 = scmp.ne.s32.totalorder %s3346_s14, %s3342_s13 }
  0x14   : > { %p3929_p1 = scmp.eq.s32.totalorder %s3466_s19, 0  ;;  %p309_p3 = scmp.eq.s32.totalorder %s2745_s20, 1 }
  0x15   : > { %p2746_p5 = scmp.ge.s32.totalorder %s3362_s18, 1  ;;  %p316_p7 = scmp.lt.s32.totalorder %s3362_s18, 3 }
  0x16   : > { %p3475_p4 = por %p3929_p1, %p72_p0  ;;  %p3480_p6 = por %p309_p3, %p72_p0 }
  0x17   : > { %p3485_p8 = pnand %p2746_p5, %p316_p7  ;;  %s3364_s24 = smov [#allocation12]  }
  0x18   : > { %s3944_s21 = scalar_select %p3475_p4, 1, 0 }
  0x19   : > { %s3945_s22 = scalar_select %p3480_p6, 1, 0 }
  0x1a   : > { %s3947_s23 = scalar_select %p3485_p8, 1, 0 }
  0x1b   : > { %3946 = sst [smem:[#allocation26_spill]] %s3945_s22  ;;  %s329_s25 = sshll.u32 %s3364_s24, 4  ;;  %s330_s25 = int_to_ptr.vmem [resolvable:$true] %s329_s25 }
  0x1c   : > { %p2988_p10 = pneg %p3485_p8  ;;  %s50_s27 = sadd.s32 1, %s3358_s17 }
  0x1d   : > { %s59_s28 = sadd.s32 1, %s3350_s15  ;;  %p52_p12 = scmp.ge.s32.totalorder %s50_s27, 2 }
  0x1e   : > { %p3494_p11 = pnand %p2988_p10, %p3929_p1  ;;  %s3119_s29 = scalar_lea.vmem %s330_s25, 128 }
  0x1f   : > { %p3120_p0 = scmp.ne.s32.totalorder %s330_s25, %s3119_s29  ;;  %p3127_p7 = scmp.lt.s32.totalorder %s330_s25, %s330_s25 }
  0x20   : > { %p3930_p13 = pneg %p3494_p11  ;;  %p3128_p9 = scmp.lt.s32.totalorder %s3119_s29, %s3119_s29 }
  0x22   : > { %p3122_p3 = pnand %p3120_p0, %p3930_p13  ;;  %p3129_p2 = por %p3128_p9, %p3127_p7 }
  0x24   : > { %p3123_p5 = pneg %p3122_p3 }
  0x26   : > { %p3130_p10 = pnand %p3129_p2, %p3123_p5 }
  0x28   : > { %3133 = shalt.err (!%p3130_p10)
}
  0x29   : > { %s3949_s3 = sld [smem:[#allocation30_spill]]  ;;  %s3987_s27 = smov (%p52_p12, %s50_s27), 0 }
  0x2a   : > { %3950 = sst [smem:[#allocation27_spill]] %s3987_s27  ;;  %p66_p2 = scmp.ne.s32.totalorder %s3350_s15, %s3346_s14 }
  0x2b   : > { %p67_p9 = scmp.eq.s32.totalorder %s3362_s18, 0  ;;  %s54_s12 = ssub.s32 %s3358_s17, %s3987_s27 }
  0x2c   : > { %p3015_p0 = scmp.lt.s32.totalorder %s3362_s18, 2  ;;  %p57_p3 = scmp.eq.s32.totalorder %s54_s12, 0 }
  0x2d   : > { %p68_p5 = por %p67_p9, %p66_p2  ;;  %p3951_p7 = scmp.eq.s32.totalorder %s3466_s19, 1 }
  0x2e   : > { %s3923_s24 = sand.u32 1, %s3350_s15   ;;  %s395_s12 = sand.u32 1, %s3362_s18  }
  0x2f   : > { %2991 = dma.hbm_to_vmem [thread:$0]  (!%p3494_p11), %s3949_s3, 128, %s330_s25, [#allocation13]  }
  0x30   : > { %p3520_p10 = por %p3951_p7, %p66_p2  ;;  %s3530_s30 = sshll.u32 %s3923_s24, 3 }
  0x31   : > { %s3526_s29 = scalar_select %p57_p3, %s3350_s15, %s59_s28  }
  0x32   : > { %s3952_s20 = scalar_select %p3520_p10, 1, 0 }
  0x33   : > { %3953 = sst [smem:[#allocation28_spill]] %s3526_s29  ;;  %s3533_s25 = sshll.u32 %s3358_s17, 7 }
  0x34   : > { %p3535_p12 = pnand %p3015_p0, %p68_p5  ;;  %s3955_s1 = sld [smem:[#allocation29_spill]] }
  0x35   : > { %s399_s28 = scalar_lea.vmem [#allocation9], %s3530_s30  ;;  %s3365_s24 = smov [#allocation14]  }
  0x36   : > { %s407_s29 = sshll.u32 %s399_s28, 4  ;;  %s340_s13 = sshll.u32 %s3365_s24, 4  ;;  %s408_s29 = int_to_ptr.vmem [resolvable:$true] %s407_s29  ;;  %s341_s13 = int_to_ptr.vmem [resolvable:$true] %s340_s13 }
  0x37   : > { %s3545_s10 = scalar_lea.sflag [#allocation10], %s395_s12  ;;  %p3931_p2 = pneg %p3535_p12 }
  0x38   : > { %s3147_s17 = scalar_lea.vmem %s408_s29, 128  ;;  %s3366_s18 = smov [#allocation9]  }
  0x39   : > { %p3148_p9 = scmp.ne.s32.totalorder %s408_s29, %s3147_s17  ;;  %s3152_s9 = sshll.u32 %s3366_s18, 4  ;;  %s3153_s9 = int_to_ptr.vmem [resolvable:$false] %s3152_s9 }
  0x3a   : > { %s405_s22 = scalar_lea.hbm %s3955_s1, %s3533_s25  ;;  %s3154_s3 = scalar_lea.vmem %s3153_s9, 256 }
  0x3b   : > { %p3150_p0 = pnand %p3148_p9, %p3931_p2  ;;  %p3155_p5 = scmp.lt.s32.totalorder %s408_s29, %s3153_s9 }
  0x3c   : > { %p3156_p7 = scmp.lt.s32.totalorder %s3154_s3, %s3147_s17 }
  0x3d   : > { %p3151_p3 = pneg %p3150_p0 }
  0x3e   : > { %p3157_p1 = por %p3156_p7, %p3155_p5 }
  0x40   : > { %p3158_p13 = pnand %p3157_p1, %p3151_p3 }
  0x42   : > { %3161 = shalt.err (!%p3158_p13)
}
  0x43   : > { %3004 = dma.hbm_to_vmem [thread:$0]  (!%p3535_p12), %s405_s22, 128, %s408_s29, %s3545_s10  }
  0x44   : > { %s3173_s27 = scalar_lea.vmem %s341_s13, 128  ;;  %p3956_p9 = pneg %p3494_p11 }
  0x45   : > { %p3174_p6 = scmp.ne.s32.totalorder %s341_s13, %s3173_s27  ;;  %p3181_p10 = scmp.lt.s32.totalorder %s341_s13, %s341_s13 }
  0x46   : > { %p3182_p4 = scmp.lt.s32.totalorder %s3173_s27, %s3173_s27 }
  0x47   : > { %p3176_p0 = pnand %p3174_p6, %p3956_p9 }
  0x48   : > { %p3183_p8 = por %p3182_p4, %p3181_p10 }
  0x49   : > { %p3177_p2 = pneg %p3176_p0 }
  0x4b   : > { %p3184_p5 = pnand %p3183_p8, %p3177_p2 }
  0x4d   : > { %3187 = shalt.err (!%p3184_p5)
}
  0x4e   : > { %s3957_s4 = sld [smem:[#allocation31_spill]]  ;;  %s3367_s18 = smov [#allocation15]  }
  0x4f   : > { %s353_s22 = sshll.u32 %s3367_s18, 4  ;;  %p3958_p6 = pmov %p3956_p9  ;;  %s354_s22 = int_to_ptr.vmem [resolvable:$true] %s353_s22 }
  0x50   : > { %s3199_s24 = scalar_lea.vmem %s354_s22, 512  ;;  %p3207_p7 = scmp.lt.s32.totalorder %s354_s22, %s354_s22 }
  0x51   : > { %p3200_p1 = scmp.ne.s32.totalorder %s354_s22, %s3199_s24  ;;  %p3208_p4 = scmp.lt.s32.totalorder %s3199_s24, %s3199_s24 }
  0x53   : > { %p3202_p13 = pnand %p3200_p1, %p3958_p6  ;;  %p3209_p8 = por %p3208_p4, %p3207_p7 }
  0x54   : > { %2994 = dma.hbm_to_vmem [thread:$0]  (!%p3494_p11), %s3957_s4, 128, %s341_s13, [#allocation13]  }
  0x55   : > { %p3203_p3 = pneg %p3202_p13 }
  0x57   : > { %p3210_p10 = pnand %p3209_p8, %p3203_p3 }
  0x59   : > { %3213 = shalt.err (!%p3210_p10)
}
  0x5a   : > { %s3368_s29 = smov 128   ;;  %s3369_s13 = smov 8  }
  0x5b   : > { %2997 = dma.hbm_to_vmem [thread:$0]  (!%p3494_p11), %s3916_s6, 512, %s354_s22, [#allocation16], %s3368_s29, %s3368_s29, %s3369_s13  }
  0x5c   : > { %s386_s9 = scalar_lea.hbm %s3910_s0, %s3533_s25  ;;  %s380_s17 = scalar_lea.vmem [#allocation6], %s3530_s30 }
  0x5d   : > { %s388_s18 = sshll.u32 %s380_s17, 4  ;;  %s3959_s24 = sand.u32 1, %s3350_s15   ;;  %s389_s18 = int_to_ptr.vmem [resolvable:$true] %s388_s18 }
  0x5e   : > { %s377_s1 = scalar_lea.sflag [#allocation7], %s3959_s24  ;;  %s3227_s4 = scalar_lea.vmem %s389_s18, 128 }
  0x5f   : > { %p3228_p2 = scmp.ne.s32.totalorder %s389_s18, %s3227_s4  ;;  %p3960_p9 = pneg %p3535_p12 }
  0x60   : > { %s3370_s26 = smov [#allocation6]  }
  0x61   : > { %p3230_p0 = pnand %p3228_p2, %p3960_p9  ;;  %s3232_s8 = sshll.u32 %s3370_s26, 4  ;;  %s3233_s8 = int_to_ptr.vmem [resolvable:$false] %s3232_s8 }
  0x62   : > { %s3234_s12 = scalar_lea.vmem %s3233_s8, 256  ;;  %p3235_p11 = scmp.lt.s32.totalorder %s389_s18, %s3233_s8 }
  0x63   : > { %p3231_p5 = pneg %p3230_p0  ;;  %p3236_p1 = scmp.lt.s32.totalorder %s3234_s12, %s3227_s4 }
  0x65   : > { %p3237_p6 = por %p3236_p1, %p3235_p11 }
  0x67   : > { %p3238_p13 = pnand %p3237_p6, %p3231_p5 }
  0x69   : > { %3241 = shalt.err (!%p3238_p13)
}
  0x6a   : > { %3001 = dma.hbm_to_vmem [thread:$0]  (!%p3535_p12), %s386_s9, 128, %s389_s18, %s377_s1  }
  0x6b   : > { %s425_s13 = scalar_lea.hbm %s3912_s2, %s3533_s25  ;;  %s418_s28 = scalar_lea.vmem [#allocation11], %s3530_s30 }
  0x6c   : > { %s427_s3 = sshll.u32 %s418_s28, 4  ;;  %p3961_p7 = pmov %p3960_p9  ;;  %s428_s3 = int_to_ptr.vmem [resolvable:$true] %s427_s3 }
  0x6d   : > { %s3255_s27 = scalar_lea.vmem %s428_s3, 128  ;;  %s3371_s4 = smov [#allocation11]  }
  0x6e   : > { %p3256_p3 = scmp.ne.s32.totalorder %s428_s3, %s3255_s27  ;;  %s3260_s8 = sshll.u32 %s3371_s4, 4  ;;  %s3261_s8 = int_to_ptr.vmem [resolvable:$false] %s3260_s8 }
  0x6f   : > { %s3262_s17 = scalar_lea.vmem %s3261_s8, 256  ;;  %p3263_p10 = scmp.lt.s32.totalorder %s428_s3, %s3261_s8 }
  0x70   : > { %p3258_p4 = pnand %p3256_p3, %p3961_p7  ;;  %p3264_p2 = scmp.lt.s32.totalorder %s3262_s17, %s3255_s27 }
  0x72   : > { %p3259_p8 = pneg %p3258_p4  ;;  %p3265_p9 = por %p3264_p2, %p3263_p10 }
  0x74   : > { %p3266_p0 = pnand %p3265_p9, %p3259_p8 }
  0x76   : > { %3269 = shalt.err (!%p3266_p0)
}
  0x77   : > { %3007 = dma.hbm_to_vmem [thread:$0]  (!%p3535_p12), %s425_s13, 128, %s428_s3, %s3545_s10  }
  0x78   : > { %p3962_p5 = scmp.ne.s32.totalorder %s3947_s23, 0 }
  0x79   : > { %s3597_s1 = sand.u32 (!%p3962_p5), 1, %s3346_s14   ;;  %p3963_p11 = scmp.ne.s32.totalorder (!%p3962_p5), %s3944_s21, 0 }
  0x7a   : > { %436 = sbr.rel (%p3962_p5) target bundleno = 2401 (0x961), region = 60  ;;  %s3600_s30 = sshll.u32 (!%p3962_p5), %s3597_s1, 3 }
  0x7b   : > { %s439_s25 = scalar_lea.sflag (!%p3962_p5), [#allocation7], %s3597_s1  ;;  %s442_s9 = scalar_lea.vmem (!%p3962_p5), [#allocation6], %s3600_s30 }
  0x7f   : > { %3321 = dma.done.wait (%p3963_p11), %s439_s25, 128  }
  0x80   : > { %3323 = vsyncadd (%p3963_p11), %s439_s25, 4294967168  ;;  %s447_s10 = sand.u32 1, %s3466_s19   ;;  %s451_s11 = scalar_lea.vmem [#allocation9], %s3600_s30 }
  0x81   : > { %s448_s23 = scalar_lea.sflag [#allocation10], %s447_s10 }
  0x82   : > { %3325 = dma.done.wait (%p3963_p11), %s448_s23, 256  }
  0x83   : > { %3327 = vsyncadd (%p3963_p11), %s448_s23, 4294967040  ;;  %s460_s18 = scalar_lea.vmem [#allocation11], %s3600_s30  ;;  %p3964_p12 = scmp.eq.s32.totalorder %s3466_s19, 0 }
  0x85   : > { %3329 = dma.done.wait (%p3964_p12), [#allocation13], 256   ;;  %p3965_p1 = pmov %p3964_p12 }
  0x87   : > { %3331 = vsyncadd (%p3965_p1), [#allocation13], 4294967040  ;;  %p3966_p6 = pmov %p3965_p1 }
  0x88   : > { %p3967_p13 = pmov %p3965_p1 }
  0x89   : > { %3333 = dma.done.wait (%p3966_p6), [#allocation16], 512  }
  0x8a   : > { %3335 = vsyncadd (%p3967_p13), [#allocation16], 4294966784  ;;  %vm532_vm0 = vcmask 64512   ;;  %v3372_v0 = vmov 0.0   ;;  %vm3373_vm1 = vmmov 0   ;;  %v3637_v1 = vld [vmem:[%s442_s9] sm:$0xff]  ;;  %v846_v20 = vlaneseq }
  0x8b   : > { %2848 = vmatprep.subr.mxu0 %v3372_v0  ;;  %2850 = vmatprep.mubr.msk.f32.mxu0 %vm3373_vm1, %v3372_v0  ;;  %533 = vst.msk [vmem:[#allocation5] sm:$0xff] %vm532_vm0, %v3372_v0  ;;  %534 = vst.msk [vmem:[#allocation5 + $0x8] sm:$0xff] %vm532_vm0, %v3372_v0  ;;  %v538_v2 = vld [vmem:[#allocation12] sm:$0xff]  ;;  %s3374_s19 = smov 112   ;;  %s3375_s21 = smov 120   ;;  %v3652_v4 = vld [vmem:[#allocation14] sm:$0xff] }
  0x8c   : > { %535 = vst.msk [vmem:[#allocation5 + $0x10] sm:$0xff] %vm532_vm0, %v3372_v0  ;;  %536 = vst.msk [vmem:[#allocation5 + $0x18] sm:$0xff] %vm532_vm0, %v3372_v0  ;;  %2853 = vmatprep.subr.mxu1 %v3372_v0  ;;  %2855 = vmatprep.mubr.msk.f32.mxu1 %vm3373_vm1, %v3372_v0  ;;  %v3645_v3 = vld [vmem:[%s451_s11] sm:$0xff]  ;;  %s3376_s24 = smov 104   ;;  %v3688_v18 = vld [vmem:[%s3915_s5] sm:$0xff]  ;;  %vm523_vm2 = vcmask 7168  }
  0x8d   : > { %691 = vrot.lane.b32.xlu0 %v3637_v1, %s3374_s19  ;;  %2849 = vmatpush3.msra.mxu0 %v538_v2  ;;  %v3377_v19 = vmov -inf   ;;  %528 = vst.msk [vmem:[#allocation4] sm:$0xff] %vm523_vm2, %v3372_v0  ;;  %529 = vst.msk [vmem:[#allocation4 + $0x8] sm:$0xff] %vm523_vm2, %v3372_v0  ;;  %v847_v21 = vand.u32 127, %v846_v20  ;;  %v844_v22 = vld [vmem:[%s460_s18] sm:$0xff]  ;;  %v3378_v32 = vmov 0  }
  0x8e   : > { %2851 = vmatmul.mubr.msk.f32.vlgmr.msra.gmra.mxu0 %vm532_vm0, %v3637_v1  ;;  %2858 = vmatprep.subr.mxu0 %v3372_v0  ;;  %524 = vst.msk [vmem:[#allocation3] sm:$0xff] %vm523_vm2, %v3377_v19  ;;  %525 = vst.msk [vmem:[#allocation3 + $0x8] sm:$0xff] %vm523_vm2, %v3377_v19  ;;  %vm850_vm3 = vcmp.ne.f32.partialorder %v844_v22, 0.0  ;;  %vm2539_vm6 = vcmask 261120   ;;  %s3970_s3 = sld [smem:[#allocation32_spill]]  ;;  %s2797_s17 = sshll.u32 %s3354_s16, 7 }
  0x8f   : > { %2859 = vmatpush3.msra.mxu0 %v538_v2  ;;  %2860 = vmatprep.mubr.msk.f32.mxu0 %vm3373_vm1, %v3372_v0  ;;  %526 = vst.msk [vmem:[#allocation3 + $0x10] sm:$0xff] %vm523_vm2, %v3377_v19  ;;  %527 = vst.msk [vmem:[#allocation3 + $0x18] sm:$0xff] %vm523_vm2, %v3377_v19  ;;  %vm851_vm4 = vcmp.lt.s32.totalorder %v847_v21, 8  ;;  %s3971_s8 = sld [smem:[#allocation33_spill]]  ;;  %s518_s25 = scalar_lea.vmem [#allocation17], %s3600_s30 }
  0x90   : > { %2868 = vmatprep.subr.mxu0 %v3372_v0  ;;  %1188 = vrot.lane.b32.xlu1 %v3645_v3, %s3375_s21  ;;  %530 = vst.msk [vmem:[#allocation4 + $0x10] sm:$0xff] %vm523_vm2, %v3372_v0  ;;  %531 = vst.msk [vmem:[#allocation4 + $0x18] sm:$0xff] %vm523_vm2, %v3372_v0  ;;  %s2586_s9 = sshll.u32 %s518_s25, 4  ;;  %s3972_s11 = sld [smem:[#allocation34_spill]]  ;;  %s2587_s9 = int_to_ptr.vmem [resolvable:$true] %s2586_s9 }
  0x91   : > { %614 = vrot.lane.b32.xlu0 %v3637_v1, %s3375_s21  ;;  %2854 = vmatpush3.msra.mxu1 %v538_v2  ;;  %vm3713_vm5 = vmand %vm850_vm3, %vm851_vm4  ;;  %s3270_s21 = scalar_lea.vmem %s2587_s9, 128  ;;  %p3973_p7 = scmp.ne.s32.totalorder %s3952_s20, 0 }
  0x92   : > { %2863 = vmatprep.subr.mxu1 %v3372_v0  ;;  %3080 = vset.pattern.permute.xlu0 %v3378_v32  ;;  %p3271_p3 = scmp.ne.s32.totalorder %s2587_s9, %s3270_s21 }
  0x93   : > { %3081 = vset.pattern.permute.xlu1 %v3378_v32 }
  0x94   : > { %768 = vrot.lane.b32.xlu1 %v3637_v1, %s3376_s24  ;;  %p3272_p4 = pnand %p3271_p3, %p3973_p7 }
  0x95   : > { %1522 = vrot.lane.b32.xlu0 %v3645_v3, %s3374_s19  ;;  %v3733_v33 = vld [vmem:[#allocation3] sm:$0xff]  ;;  %v3772_v53 = vld [vmem:[#allocation3 + $0x8] sm:$0xff]  ;;  %s2572_s19 = scalar_lea.sflag [#allocation8], %s3597_s1 }
  0x96   : > { %s2584_s18 = scalar_lea.hbm %s3972_s11, %s2797_s17  ;;  %p3273_p8 = pneg %p3272_p4 }
  0xff   : > { %v692_v5 = vpop.permute.xlu0 %691 }
 0x100   : > { %2861 = vmatmul.mubr.msk.f32.vlgmr.msra.gmra.mxu0 %vm532_vm0, %v692_v5 }
 0x101   : > { %2869 = vmatpush3.msra.mxu0 %v3652_v4  ;;  %2870 = vmatprep.mubr.msk.f32.mxu0 %vm3373_vm1, %v3372_v0 }
 0x102   : > { %2878 = vmatprep.subr.mxu0 %v3372_v0  ;;  %v3674_v14 = vpop.permute.xlu1 %1188 }
 0x103   : > { %v615_v6 = vpop.permute.xlu0 %614 }
 0x104   : > { %2871 = vmatmul.mubr.msk.f32.vlgmr.msra.gmra.mxu0 %vm532_vm0, %v3645_v3  ;;  %2856 = vmatmul.mubr.msk.f32.vlgmr.msra.gmra.mxu1 %vm532_vm0, %v615_v6 }
 0x105   : > { %2880 = vmatprep.mubr.msk.f32.mxu0 %vm3373_vm1, %v3372_v0  ;;  %2864 = vmatpush3.msra.mxu1 %v538_v2 }
 0x106   : > { %2865 = vmatprep.mubr.msk.f32.mxu1 %vm3373_vm1, %v3372_v0  ;;  %2873 = vmatprep.subr.mxu1 %v3372_v0  ;;  %v769_v17 = vpop.permute.xlu1 %768 }
 0x107   : > { %v3723_v31 = vpop.permute.xlu0 %1522 }
 0x108   : > { %2866 = vmatmul.mubr.msk.f32.vlgmr.msra.gmra.mxu1 %vm532_vm0, %v769_v17 }
 0x109   : > { %2874 = vmatpush3.msra.mxu1 %v3688_v18  ;;  %2875 = vmatprep.mubr.msk.f32.mxu1 %vm3373_vm1, %v3372_v0 }
 0x10a   : > { %2883 = vmatprep.subr.mxu1 %v3372_v0 }
 0x10c   : > { %2876 = vmatmul.mubr.msk.f32.vlgmr.msra.gmra.mxu1 %vm532_vm0, %v3645_v3 }
 0x10d   : > { %2885 = vmatprep.mubr.msk.f32.mxu1 %vm3373_vm1, %v3372_v0 }
 0x14e   : > { %v608_v7 = vpop.f32.mrf.mxu0 }
 0x14f   : > { %612 = vst.msk [vmem:[#allocation2] sm:$0xff] %vm532_vm0, %v608_v7 }
 0x150   : > { %v2852_v8 = vpop.f32.mrf.mxu0 }
 0x156   : > { %v1002_v13 = vld [vmem:[#allocation2] sm:$0xff] }
 0x1c0   : > { %v761_v9 = vpop.f32.mrf.mxu0 }
 0x1c1   : > { %766 = vst.msk [vmem:[#allocation2 + $0x10] sm:$0xff] %vm532_vm0, %v761_v9 }
 0x1c2   : > { %v2862_v10 = vpop.f32.mrf.mxu0 }
 0x1c3   : > { %v1747_v10 = vld [vmem:[#allocation3 + $0x10] sm:$0xff] }
 0x1c4   : > { %v927_v11 = vpop.f32.mrf.mxu0  ;;  %v684_v15 = vpop.f32.mrf.mxu1 }
 0x1c5   : > { %2879 = vmatpush3.xpose.msk.msra.mxu0 %vm532_vm0, %v927_v11  ;;  %689 = vst.msk [vmem:[#allocation2 + $0x8] sm:$0xff] %vm532_vm0, %v684_v15 }
 0x1c6   : > { %v2872_v12 = vpop.f32.mrf.mxu0  ;;  %2888 = vmatprep.subr.mxu0 %v3372_v0  ;;  %v2857_v16 = vpop.f32.mrf.mxu1 }
 0x1c8   : > { %2881 = vmatmul.mubr.msk.f32.vlgmr.msra.gmra.mxu0 %vm532_vm0, %v1002_v13  ;;  %v838_v37 = vpop.f32.mrf.mxu1  ;;  %v1668_v47 = vld [vmem:[#allocation2 + $0x10] sm:$0xff] }
 0x1c9   : > { %2889 = vmatpush3.msra.mxu0 %v3652_v4  ;;  %2890 = vmatprep.mubr.msk.f32.mxu0 %vm3373_vm1, %v3372_v0  ;;  %843 = vst.msk [vmem:[#allocation2 + $0x18] sm:$0xff] %vm532_vm0, %v838_v37 }
 0x1ca   : > { %2898 = vmatprep.subr.mxu0 %v3372_v0  ;;  %v2867_v38 = vpop.f32.mrf.mxu1 }
 0x1cc   : > { %2891 = vmatmul.mubr.msk.f32.vlgmr.msra.gmra.mxu0 %vm532_vm0, %v3674_v14  ;;  %v1334_v29 = vld [vmem:[#allocation2 + $0x8] sm:$0xff]  ;;  %v998_v39 = vpop.f32.mrf.mxu1 }
 0x1cd   : > { %2900 = vmatprep.mubr.msk.f32.mxu0 %vm3373_vm1, %v3372_v0  ;;  %2884 = vmatpush3.msra.mxu1 %v998_v39 }
 0x1ce   : > { %2893 = vmatprep.subr.mxu1 %v3372_v0  ;;  %v2877_v40 = vpop.f32.mrf.mxu1 }
 0x1d0   : > { %v2002_v2 = vld [vmem:[#allocation2 + $0x18] sm:$0xff] }
 0x288   : > { %v1075_v24 = vpop.f32.mrf.mxu0 }
 0x289   : > { %v1079_v25 = vsel %vm3713_vm5, %v1075_v24, -1e+20 }
 0x28a   : > { %v2882_v26 = vpop.f32.mrf.mxu0  ;;  %v1081_v27 = vsel %vm532_vm0, %v1079_v25, -inf }
 0x28b   : > { %1082 = vmax.xlane.f32.xlu1 %v1081_v27 }
 0x28c   : > { %v1258_v28 = vpop.f32.mrf.mxu0 }
 0x28d   : > { %2899 = vmatpush3.xpose.msk.msra.mxu0 %vm532_vm0, %v1258_v28 }
 0x28e   : > { %2908 = vmatprep.subr.mxu0 %v3372_v0  ;;  %v2892_v30 = vpop.f32.mrf.mxu0 }
 0x28f   : > { %v2081_v30 = vld [vmem:[#allocation3 + $0x18] sm:$0xff] }
 0x290   : > { %2901 = vmatmul.mubr.msk.f32.vlgmr.msra.gmra.mxu0 %vm532_vm0, %v1334_v29 }
 0x291   : > { %2909 = vmatpush3.msra.mxu0 %v3652_v4  ;;  %2910 = vmatprep.mubr.msk.f32.mxu0 %vm3373_vm1, %v3372_v0 }
 0x292   : > { %2918 = vmatprep.subr.mxu0 %v3372_v0 }
 0x294   : > { %2911 = vmatmul.mubr.msk.f32.vlgmr.msra.gmra.mxu0 %vm532_vm0, %v3723_v31 }
 0x295   : > { %2920 = vmatprep.mubr.msk.f32.mxu0 %vm3373_vm1, %v3372_v0 }
 0x314   : > { %v1083_v34 = vpop.xlane.xlu1 %1082 }
 0x315   : > { %v3736_v35 = vmax.f32 %v3733_v33, %v1083_v34 }
 0x317   : > { %v1085_v36 = vsub.f32 %v3733_v33, %v3736_v35  ;;  %1186 = vst.msk [vmem:[#allocation3] sm:$0xff] %vm523_vm2, %v3736_v35  ;;  %1090 = vperm.xlu0 %3080, %v3736_v35   ;;  %v1764_v33 = vld [vmem:[#allocation4 + $0x10] sm:$0xff] }
 0x319   : > { %v1086_v29 = vmul.f32 1.442695, %v1085_v36 }
 0x31b   : > { %1856 = vrot.lane.b32.xlu0 %v3645_v3, %s3376_s24  ;;  %s3379_s24 = smov [#allocation17]  }
 0x31c   : > { %s3274_s26 = sshll.u32 %s3379_s24, 4  ;;  %s3275_s26 = int_to_ptr.vmem [resolvable:$false] %s3274_s26 }
 0x31d   : > { %s3276_s16 = scalar_lea.vmem %s3275_s26, 256  ;;  %p3277_p10 = scmp.lt.s32.totalorder %s2587_s9, %s3275_s26 }
 0x31e   : > { %p3278_p2 = scmp.lt.s32.totalorder %s3276_s16, %s3270_s21 }
 0x320   : > { %p3279_p9 = por %p3278_p2, %p3277_p10 }
 0x322   : > { %p3280_p0 = pnand %p3279_p9, %p3273_p8 }
 0x350   : > { %v1407_v41 = vpop.f32.mrf.mxu0 }
 0x351   : > { %v1411_v42 = vsel %vm3713_vm5, %v1407_v41, -1e+20 }
 0x352   : > { %v2902_v43 = vpop.f32.mrf.mxu0  ;;  %v1414_v44 = vsel %vm532_vm0, %v1411_v42, -inf }
 0x353   : > { %1415 = vmax.xlane.f32.xlu0 %v1414_v44 }
 0x354   : > { %v1592_v45 = vpop.f32.mrf.mxu0 }
 0x355   : > { %2919 = vmatpush3.xpose.msk.msra.mxu0 %vm532_vm0, %v1592_v45 }
 0x356   : > { %v2912_v46 = vpop.f32.mrf.mxu0  ;;  %2928 = vmatprep.subr.mxu0 %v3372_v0 }
 0x358   : > { %2921 = vmatmul.mubr.msk.f32.vlgmr.msra.gmra.mxu0 %vm532_vm0, %v1668_v47 }
 0x359   : > { %2929 = vmatpush3.msra.mxu0 %v3652_v4  ;;  %2930 = vmatprep.mubr.msk.f32.mxu0 %vm3373_vm1, %v3372_v0 }
 0x35a   : > { %2938 = vmatprep.subr.mxu0 %v3372_v0 }
 0x392   : > { %v1091_v48 = vpop.permute.xlu0 %1090 }
 0x393   : > { %v1093_v49 = vsub.f32 %v1079_v25, %v1091_v48 }
 0x395   : > { %v1094_v50 = vmul.f32 1.442695, %v1093_v49 }
 0x396   : > { %v3757_v51 = vpop.permute.xlu0 %1856 }
 0x397   : > { %3082 = vpow2.f32 %v1094_v50  ;;  %2931 = vmatmul.mubr.msk.f32.vlgmr.msra.gmra.mxu0 %vm532_vm0, %v3757_v51 }
 0x398   : > { %2940 = vmatprep.mubr.msk.f32.mxu0 %vm3373_vm1, %v3372_v0 }
 0x3a4   : > { %v3083_v52 = vpop.eup %3082 }
 0x3a5   : > { %2886 = vmatmul.mubr.msk.f32.vlgmr.msra.gmra.mxu1 %vm532_vm0, %v3083_v52  ;;  %v1098_v19 = vsel %vm532_vm0, %v3083_v52, 0.0 }
 0x3a6   : > { %2894 = vmatpush3.msra.mxu1 %v3688_v18  ;;  %2895 = vmatprep.mubr.msk.f32.mxu1 %vm3373_vm1, %v3372_v0 }
 0x3a7   : > { %2903 = vmatprep.subr.mxu1 %v3372_v0 }
 0x3a9   : > { %2896 = vmatmul.mubr.msk.f32.vlgmr.msra.gmra.mxu1 %vm532_vm0, %v3674_v14 }
 0x3aa   : > { %2905 = vmatprep.mubr.msk.f32.mxu1 %vm3373_vm1, %v3372_v0 }
 0x3dc   : > { %v1416_v54 = vpop.xlane.xlu0 %1415 }
 0x3dd   : > { %v3775_v55 = vmax.f32 %v3772_v53, %v1416_v54 }
 0x3df   : > { %v1418_v56 = vsub.f32 %v3772_v53, %v3775_v55  ;;  %1520 = vst.msk [vmem:[#allocation3 + $0x8] sm:$0xff] %vm523_vm2, %v3775_v55  ;;  %1423 = vperm.xlu1 %3081, %v3775_v55  }
 0x418   : > { %v1741_v57 = vpop.f32.mrf.mxu0 }
 0x419   : > { %v1745_v58 = vsel %vm3713_vm5, %v1741_v57, -1e+20  ;;  %v2201_v57 = vld [vmem:[#allocation15] sm:$0xff] }
 0x41a   : > { %v2922_v59 = vpop.f32.mrf.mxu0  ;;  %v1748_v60 = vsel %vm532_vm0, %v1745_v58, -inf }
 0x41b   : > { %1749 = vmax.xlane.f32.xlu0 %v1748_v60  ;;  %v1419_v59 = vmul.f32 1.442695, %v1418_v56 }
 0x457   : > { %v1926_v61 = vpop.f32.mrf.mxu0 }
 0x458   : > { %2939 = vmatpush3.xpose.msk.msra.mxu0 %vm532_vm0, %v1926_v61 }
 0x459   : > { %v2932_v62 = vpop.f32.mrf.mxu0  ;;  %2948 = vmatprep.subr.mxu0 %v3372_v0 }
 0x45a   : > { %v1424_v63 = vpop.permute.xlu1 %1423 }
 0x45b   : > { %v1426_v3 = vsub.f32 %v1411_v42, %v1424_v63  ;;  %2941 = vmatmul.mubr.msk.f32.vlgmr.msra.gmra.mxu0 %vm532_vm0, %v2002_v2  ;;  %v1430_v63 = vld [vmem:[#allocation4 + $0x8] sm:$0xff] }
 0x45c   : > { %2950 = vmatprep.mubr.msk.f32.mxu0 %vm3373_vm1, %v3372_v0 }
 0x45d   : > { %v1427_v4 = vmul.f32 1.442695, %v1426_v3  ;;  %v1104_v3 = vld [vmem:[#allocation5] sm:$0xff] }
 0x45f   : > { %3084 = vpow2.f32 %v1427_v4 }
 0x465   : > { %v3790_v5 = vpop.f32.mrf.mxu1 }
 0x467   : > { %v2887_v6 = vpop.f32.mrf.mxu1 }
 0x469   : > { %v1329_v7 = vpop.f32.mrf.mxu1 }
 0x46a   : > { %2904 = vmatpush3.msra.mxu1 %v1329_v7 }
 0x46b   : > { %v2897_v8 = vpop.f32.mrf.mxu1  ;;  %2913 = vmatprep.subr.mxu1 %v3372_v0 }
 0x46c   : > { %v3085_v9 = vpop.eup %3084 }
 0x46d   : > { %2906 = vmatmul.mubr.msk.f32.vlgmr.msra.gmra.mxu1 %vm532_vm0, %v3085_v9  ;;  %v1432_v44 = vsel %vm532_vm0, %v3085_v9, 0.0 }
 0x46e   : > { %2914 = vmatpush3.msra.mxu1 %v3688_v18  ;;  %2915 = vmatprep.mubr.msk.f32.mxu1 %vm3373_vm1, %v3372_v0 }
 0x46f   : > { %2923 = vmatprep.subr.mxu1 %v3372_v0 }
 0x471   : > { %2916 = vmatmul.mubr.msk.f32.vlgmr.msra.gmra.mxu1 %vm532_vm0, %v3723_v31 }
 0x472   : > { %2925 = vmatprep.mubr.msk.f32.mxu1 %vm3373_vm1, %v3372_v0 }
 0x4a4   : > { %v1750_v11 = vpop.xlane.xlu0 %1749 }
 0x4a5   : > { %v1751_v12 = vmax.f32 %v1747_v10, %v1750_v11 }
 0x4a7   : > { %v1752_v13 = vsub.f32 %v1747_v10, %v1751_v12  ;;  %1854 = vst.msk [vmem:[#allocation3 + $0x10] sm:$0xff] %vm523_vm2, %v1751_v12  ;;  %1757 = vperm.xlu0 %3080, %v1751_v12  }
 0x4a9   : > { %v1753_v37 = vmul.f32 1.442695, %v1752_v13  ;;  %v2212_v13 = vld [vmem:[#allocation15 + $0x8] sm:$0xff] }
 0x4aa   : > { %2949 = vmatpush3.msra.mxu0 %v2212_v13 }
 0x4ab   : > { %2958 = vmatprep.subr.mxu0 %v3372_v0 }
 0x51b   : > { %v2075_v14 = vpop.f32.mrf.mxu0 }
 0x51c   : > { %v2079_v15 = vsel %vm3713_vm5, %v2075_v14, -1e+20 }
 0x51d   : > { %v2942_v16 = vpop.f32.mrf.mxu0  ;;  %v2082_v17 = vsel %vm532_vm0, %v2079_v15, -inf }
 0x51e   : > { %2083 = vmax.xlane.f32.xlu1 %v2082_v17  ;;  %v2098_v16 = vld [vmem:[#allocation4 + $0x18] sm:$0xff] }
 0x522   : > { %1099 = vadd.xlane.f32.xlu1 %v1098_v19  ;;  %v1758_v20 = vpop.permute.xlu0 %1757 }
 0x523   : > { %v1760_v21 = vsub.f32 %v1745_v58, %v1758_v20 }
 0x525   : > { %v1761_v22 = vmul.f32 1.442695, %v1760_v21  ;;  %v1438_v21 = vld [vmem:[#allocation5 + $0x8] sm:$0xff] }
 0x527   : > { %3086 = vpow2.f32 %v1761_v22 }
 0x528   : > { %3088 = vpow2.f32 %v1086_v29 }
 0x529   : > { %3090 = vpow2.f32 %v1753_v37 }
 0x52d   : > { %v3807_v24 = vpop.f32.mrf.mxu1 }
 0x52f   : > { %v2907_v25 = vpop.f32.mrf.mxu1 }
 0x531   : > { %v1663_v26 = vpop.f32.mrf.mxu1 }
 0x532   : > { %2924 = vmatpush3.msra.mxu1 %v1663_v26  ;;  %v1772_v26 = vld [vmem:[#allocation5 + $0x10] sm:$0xff] }
 0x533   : > { %v2917_v27 = vpop.f32.mrf.mxu1  ;;  %2933 = vmatprep.subr.mxu1 %v3372_v0 }
 0x534   : > { %v3087_v23 = vpop.eup %3086 }
 0x535   : > { %2926 = vmatmul.mubr.msk.f32.vlgmr.msra.gmra.mxu1 %vm532_vm0, %v3087_v23  ;;  %v1766_v28 = vsel %vm532_vm0, %v3087_v23, 0.0  ;;  %v3089_v31 = vpop.eup %3088 }
 0x536   : > { %1767 = vadd.xlane.f32.xlu1 %v1766_v28  ;;  %2934 = vmatpush3.msra.mxu1 %v3688_v18  ;;  %v1096_v18 = vld [vmem:[#allocation4] sm:$0xff]  ;;  %v3091_v42 = vpop.eup %3090 }
 0x537   : > { %2935 = vmatprep.mubr.msk.f32.mxu1 %vm3373_vm1, %v3372_v0  ;;  %2943 = vmatprep.subr.mxu1 %v3372_v0  ;;  %v1097_v39 = vmul.f32 %v3089_v31, %v1096_v18  ;;  %v1765_v35 = vmul.f32 %v3091_v42, %v1764_v33 }
 0x539   : > { %2936 = vmatmul.mubr.msk.f32.vlgmr.msra.gmra.mxu1 %vm532_vm0, %v3757_v51 }
 0x53a   : > { %2945 = vmatprep.mubr.msk.f32.mxu1 %vm3373_vm1, %v3372_v0 }
 0x5a7   : > { %v2084_v32 = vpop.xlane.xlu1 %2083 }
 0x5a8   : > { %v2085_v34 = vmax.f32 %v2081_v30, %v2084_v32 }
 0x5aa   : > { %v2086_v38 = vsub.f32 %v2081_v30, %v2085_v34  ;;  %2188 = vst.msk [vmem:[#allocation3 + $0x18] sm:$0xff] %vm523_vm2, %v2085_v34  ;;  %2091 = vperm.xlu0 %3080, %v2085_v34  }
 0x5ab   : > { %v1100_v40 = vpop.xlane.xlu1 %1099 }
 0x5ac   : > { %v1101_v41 = vadd.f32 %v1100_v40, %v1097_v39  ;;  %v2087_v61 = vmul.f32 1.442695, %v2086_v38  ;;  %v2369_v38 = vld [vmem:[#allocation15 + $0x10] sm:$0xff] }
 0x5ae   : > { %1103 = vst.msk [vmem:[#allocation4] sm:$0xff] %vm523_vm2, %v1101_v41  ;;  %v2106_v41 = vld [vmem:[#allocation5 + $0x18] sm:$0xff] }
 0x5b5   : > { %v2193_v45 = vld [vmem:[#allocation4] sm:$0xff] }
 0x5b6   : > { %3092 = vrcp.f32 %v2193_v45 }
 0x5bf   : > { %v1768_v36 = vpop.xlane.xlu1 %1767 }
 0x5c0   : > { %v1769_v43 = vadd.f32 %v1768_v36, %v1765_v35 }
 0x5c2   : > { %1770 = vst.msk [vmem:[#allocation4 + $0x10] sm:$0xff] %vm523_vm2, %v1769_v43 }
 0x5c3   : > { %v3093_v46 = vpop.eup %3092 }
 0x5c9   : > { %1433 = vadd.xlane.f32.xlu0 %v1432_v44  ;;  %v2360_v9 = vld [vmem:[#allocation4 + $0x10] sm:$0xff] }
 0x5df   : > { %1107 = vperm.xlu0 %3080, %v3089_v31  }
 0x5e3   : > { %2197 = vperm.xlu0 %3080, %v3093_v46  }
 0x5f5   : > { %v3827_v47 = vpop.f32.mrf.mxu1 }
 0x5f7   : > { %v2927_v48 = vpop.f32.mrf.mxu1 }
 0x5f9   : > { %v1997_v49 = vpop.f32.mrf.mxu1 }
 0x5fa   : > { %2944 = vmatpush3.msra.mxu1 %v1997_v49 }
 0x5fb   : > { %v2937_v50 = vpop.f32.mrf.mxu1  ;;  %2953 = vmatprep.subr.mxu1 %v3372_v0 }
 0x625   : > { %v2092_v51 = vpop.permute.xlu0 %2091 }
 0x626   : > { %v2094_v52 = vsub.f32 %v2079_v15, %v2092_v51  ;;  %v2454_v15 = vld [vmem:[#allocation15 + $0x18] sm:$0xff] }
 0x628   : > { %v2095_v54 = vmul.f32 1.442695, %v2094_v52 }
 0x62a   : > { %3094 = vpow2.f32 %v2095_v54 }
 0x62b   : > { %3096 = vpow2.f32 %v1419_v59 }
 0x62c   : > { %3098 = vpow2.f32 %v2087_v61 }
 0x637   : > { %v3095_v58 = vpop.eup %3094 }
 0x638   : > { %2946 = vmatmul.mubr.msk.f32.vlgmr.msra.gmra.mxu1 %vm532_vm0, %v3095_v58  ;;  %v2100_v60 = vsel %vm532_vm0, %v3095_v58, 0.0  ;;  %v3097_v62 = vpop.eup %3096 }
 0x639   : > { %2101 = vadd.xlane.f32.xlu1 %v2100_v60  ;;  %2954 = vmatpush3.msra.mxu1 %v2201_v57  ;;  %v3099_v53 = vpop.eup %3098  ;;  %v1431_v55 = vmul.f32 %v3097_v62, %v1430_v63  ;;  %v2793_v57 = vld [vmem:[%s3917_s7] ss:$0 sm:$0xff] }
 0x63a   : > { %2955 = vmatprep.mubr.msk.f32.mxu1 %vm3373_vm1, %v3372_v0  ;;  %2963 = vmatprep.subr.mxu1 %v3372_v0  ;;  %v2099_v17 = vmul.f32 %v3099_v53, %v2098_v16 }
 0x64a   : > { %1441 = vperm.xlu1 %3081, %v3097_v62  }
 0x64e   : > { %1775 = vperm.xlu1 %3081, %v3091_v42  }
 0x652   : > { %v1434_v56 = vpop.xlane.xlu0 %1433  ;;  %2109 = vperm.xlu1 %3081, %v3099_v53  }
 0x653   : > { %v1435_v2 = vadd.f32 %v1434_v56, %v1431_v55 }
 0x655   : > { %1436 = vst.msk [vmem:[#allocation4 + $0x8] sm:$0xff] %vm523_vm2, %v1435_v2 }
 0x65a   : > { %v1108_v4 = vpop.permute.xlu0 %1107 }
 0x65b   : > { %v1110_v6 = vmul.f32 %v1108_v4, %v1104_v3 }
 0x65c   : > { %v2203_v7 = vld [vmem:[#allocation4 + $0x8] sm:$0xff] }
 0x65d   : > { %v1184_v8 = vadd.f32 %v3790_v5, %v1110_v6  ;;  %3100 = vrcp.f32 %v2203_v7 }
 0x65e   : > { %3102 = vrcp.f32 %v2360_v9  ;;  %v2198_v11 = vpop.permute.xlu0 %2197  ;;  %v2795_v9 = vld [vmem:[%s3971_s8] ss:$0 sm:$0xff] }
 0x65f   : > { %1185 = vst.msk [vmem:[#allocation5] sm:$0xff] %vm532_vm0, %v1184_v8 }
 0x666   : > { %v2192_v10 = vld [vmem:[#allocation5] sm:$0xff] }
 0x667   : > { %v2200_v12 = vmul.f32 %v2198_v11, %v2192_v10 }
 0x669   : > { %2956 = vmatmul.mubr.msk.f32.vlgmr.msra.gmra.mxu1 %vm532_vm0, %v2200_v12 }
 0x66a   : > { %v3101_v14 = vpop.eup %3100  ;;  %2965 = vmatprep.mubr.msk.f32.mxu1 %vm3373_vm1, %v3372_v0  ;;  %2964 = vmatpush3.msra.mxu1 %v2454_v15 }
 0x66b   : > { %2207 = vperm.xlu1 %3081, %v3101_v14   ;;  %v3103_v5 = vpop.eup %3102 }
 0x66f   : > { %2364 = vperm.xlu1 %3081, %v3103_v5  }
 0x6c2   : > { %v2102_v19 = vpop.xlane.xlu1 %2101 }
 0x6c3   : > { %v2103_v20 = vadd.f32 %v2102_v19, %v2099_v17 }
 0x6c5   : > { %2104 = vst.msk [vmem:[#allocation4 + $0x18] sm:$0xff] %vm523_vm2, %v2103_v20 }
 0x6c6   : > { %v1442_v22 = vpop.permute.xlu1 %1441 }
 0x6c7   : > { %v1444_v25 = vmul.f32 %v1442_v22, %v1438_v21 }
 0x6c9   : > { %v1518_v27 = vadd.f32 %v3807_v24, %v1444_v25 }
 0x6ca   : > { %v1776_v23 = vpop.permute.xlu1 %1775 }
 0x6cb   : > { %1519 = vst.msk [vmem:[#allocation5 + $0x8] sm:$0xff] %vm532_vm0, %v1518_v27  ;;  %v1778_v28 = vmul.f32 %v1776_v23, %v1772_v26 }
 0x6cc   : > { %v2445_v29 = vld [vmem:[#allocation4 + $0x18] sm:$0xff] }
 0x6cd   : > { %v1852_v30 = vadd.f32 %v3827_v47, %v1778_v28  ;;  %3104 = vrcp.f32 %v2445_v29 }
 0x6ce   : > { %v2110_v32 = vpop.permute.xlu1 %2109 }
 0x6cf   : > { %1853 = vst.msk [vmem:[#allocation5 + $0x10] sm:$0xff] %vm532_vm0, %v1852_v30  ;;  %v2112_v42 = vmul.f32 %v2110_v32, %v2106_v41 }
 0x6d2   : > { %v2202_v18 = vld [vmem:[#allocation5 + $0x8] sm:$0xff] }
 0x6d6   : > { %v2359_v24 = vld [vmem:[#allocation5 + $0x10] sm:$0xff] }
 0x6da   : > { %v3105_v31 = vpop.eup %3104 }
 0x6db   : > { %2449 = vperm.xlu0 %3080, %v3105_v31  }
 0x6e6   : > { %v2208_v34 = vpop.permute.xlu1 %2207 }
 0x6e7   : > { %v2210_v37 = vmul.f32 %v2208_v34, %v2202_v18 }
 0x6e9   : > { %2951 = vmatmul.mubr.msk.f32.vlgmr.msra.gmra.mxu0 %vm532_vm0, %v2210_v37 }
 0x6ea   : > { %v2365_v39 = vpop.permute.xlu1 %2364  ;;  %2959 = vmatpush3.msra.mxu0 %v2369_v38  ;;  %2960 = vmatprep.mubr.msk.f32.mxu0 %vm3373_vm1, %v3372_v0 }
 0x6eb   : > { %v2367_v40 = vmul.f32 %v2365_v39, %v2359_v24 }
 0x6ed   : > { %2961 = vmatmul.mubr.msk.f32.vlgmr.msra.gmra.mxu0 %vm532_vm0, %v2367_v40 }
 0x6f8   : > { %v2182_v33 = vpop.f32.mrf.mxu1 }
 0x6f9   : > { %v2186_v35 = vadd.f32 %v2182_v33, %v2112_v42 }
 0x6fa   : > { %v2947_v36 = vpop.f32.mrf.mxu1 }
 0x6fb   : > { %2187 = vst.msk [vmem:[#allocation5 + $0x18] sm:$0xff] %vm532_vm0, %v2186_v35 }
 0x702   : > { %v2444_v45 = vld [vmem:[#allocation5 + $0x18] sm:$0xff] }
 0x729   : > { %v2355_v43 = vpop.f32.mrf.mxu1 }
 0x72b   : > { %v2957_v44 = vpop.f32.mrf.mxu1 }
 0x756   : > { %v2450_v46 = vpop.permute.xlu0 %2449 }
 0x757   : > { %v2452_v47 = vmul.f32 %v2450_v46, %v2444_v45 }
 0x759   : > { %2966 = vmatmul.mubr.msk.f32.vlgmr.msra.gmra.mxu1 %vm532_vm0, %v2452_v47 }
 0x7a9   : > { %v2282_v48 = vpop.f32.mrf.mxu0 }
 0x7aa   : > { %v2356_v0 = vadd.f32 %v2355_v43, %v2282_v48 }
 0x7ab   : > { %v2952_v49 = vpop.f32.mrf.mxu0 }
 0x7ad   : > { %v2439_v50 = vpop.f32.mrf.mxu0 }
 0x7ae   : > { %v2443_v51 = vadd.f32 %v2439_v50, %v2356_v0 }
 0x7af   : > { %v2962_v52 = vpop.f32.mrf.mxu0 }
 0x819   : > { %v2524_v54 = vpop.f32.mrf.mxu1 }
 0x81a   : > { %v2528_v58 = vadd.f32 %v2524_v54, %v2443_v51 }
 0x81b   : > { %v2967_v59 = vpop.f32.mrf.mxu1 }
 0x81c   : > { %v2536_v60 = vadd.f32 %v2793_v57, %v2528_v58 }
 0x81e   : > { %v2538_v61 = vadd.f32 %v2536_v60, %v3637_v1  ;;  %v2794_v1 = vld [vmem:[%s3970_s3] ss:$0 sm:$0xff] }
 0x820   : > { %v2540_v62 = vsel %vm2539_vm6, %v2538_v61, 0.0 }
 0x821   : > { %2541 = vadd.xlane.f32.xlu1 %v2540_v62 }
 0x8aa   : > { %v2542_v63 = vpop.xlane.xlu1 %2541 }
 0x8ab   : > { %v2544_v53 = vmul.f32 0.03125, %v2542_v63 }
 0x8ad   : > { %v2545_v55 = vsub.f32 %v2538_v61, %v2544_v53 }
 0x8af   : > { %v2546_v56 = vmul.f32 %v2545_v55, %v2545_v55 }
 0x8b1   : > { %v2547_v2 = vsel %vm2539_vm6, %v2546_v56, 0.0 }
 0x8b2   : > { %2548 = vadd.xlane.f32.xlu0 %v2547_v2 }
 0x93b   : > { %v2549_v3 = vpop.xlane.xlu0 %2548 }
 0x93c   : > { %v2550_v4 = vmul.f32 0.03125, %v2549_v3 }
 0x93e   : > { %v2551_v6 = vadd.f32 1e-05, %v2550_v4 }
 0x940   : > { %3106 = vrsqrt.f32 %v2551_v6 }
 0x94d   : > { %v3107_v7 = vpop.eup %3106 }
 0x94e   : > { %v2553_v8 = vmul.f32 %v3107_v7, %v2545_v55 }
 0x950   : > { %v2561_v10 = vmul.f32 %v2794_v1, %v2553_v8 }
 0x952   : > { %v2569_v11 = vadd.f32 %v2795_v9, %v2561_v10 }
 0x954   : > { %2570 = vst.msk [vmem:[%s518_s25] sm:$0xff] %vm2539_vm6, %v2569_v11 }
 0x955   : > { %3283 = shalt.err (!%p3280_p0)
}
 0x956   : > { %s3284_s30 = scalar_lea.hbm %s2584_s18, 128  ;;  %s3288_s22 = scalar_lea.hbm %s3972_s11, 256 }
 0x957   : > { %p3285_p5 = scmp.ne.s32.totalorder %s2584_s18, %s3284_s30  ;;  %p3289_p1 = scmp.lt.s32.totalorder %s2584_s18, %s3972_s11 }
 0x958   : > { %p3290_p6 = scmp.lt.s32.totalorder %s3288_s22, %s3284_s30 }
 0x959   : > { %p3286_p11 = pnand %p3285_p5, %p3973_p7 }
 0x95a   : > { %p3291_p13 = por %p3290_p6, %p3289_p1 }
 0x95b   : > { %p3287_p12 = pneg %p3286_p11 }
 0x95d   : > { %p3292_p3 = pnand %p3291_p13, %p3287_p12 }
 0x95f   : > { %3295 = shalt.err (!%p3292_p3)
}
 0x960   : > { %2986 = dma.vmem_to_hbm [thread:$0]  (%p3973_p7), %s2587_s9, 128, %s2584_s18, %s2572_s19  }
 0x961 PF: > { %s3974_s28 = sld [smem:[#allocation23_spill]] }
 0x962   : > { %s3975_s3 = sld [smem:[#allocation26_spill]] }
 0x963   : > { %s3976_s27 = sld [smem:[#allocation25_spill]] }
 0x967   : > { %s2598_s4 = sand.u32 1, %s3974_s28  }
 0x968   : > { %p3977_p4 = scmp.ne.s32.totalorder %s3975_s3, 0  ;;  %s2599_s8 = scalar_lea.sflag [#allocation8], %s2598_s4 }
 0x969   : > { %p3978_p8 = scmp.ge.s32.totalorder %s3976_s27, 2 }
 0x96b   : > { %p3009_p10 = pnand %p3978_p8, %p3977_p4 }
 0x96d   : > { %p3010_p2 = pneg %p3009_p10 }
 0x96f   : > { %3337 = dma.done.wait (%p3010_p2), %s2599_s8, 128  }
 0x970   : > { %3339 = vsyncadd (%p3010_p2), %s2599_s8, 4294967168  ;;  %s31_s18 = sadd.s32 1, %s3976_s27   ;;  %s3979_s17 = sld [smem:[#allocation28_spill]] }
 0x971   : > { %p28_p9 = scmp.ge.s32.totalorder %s31_s18, 4   ;;  %s3980_s16 = sld [smem:[#allocation24_spill]] }
 0x972   : > { %s3981_s20 = sld [smem:[#allocation27_spill]]  ;;  %s3982_s13 = smov %s3346_s14 }
 0x973   : > { %s3983_s14 = smov %s3350_s15 }
 0x974   :  { %30 = sbr.rel (!%p28_p9) target bundleno = 17 (0x11), region = 167 }
 0x976   : > { %s3984_s15 = smov %s3979_s17 }
 0x978   : > { %s3985_s17 = smov %s3981_s20 }
 0x979   :  { %2604 = vsyncpa [#allocation7], 1 }
 0x97a   :  { %2606 = vsyncpa [#allocation7 + $0x1], 1 }
 0x97b   :  { %2607 = vsyncpa [#allocation10], 1 }
 0x97c   :  { %2609 = vsyncpa [#allocation10 + $0x1], 1 }
 0x97d   :  { %2610 = vsyncpa [#allocation13], 1 }
 0x97e   :  { %2611 = vsyncpa [#allocation16], 1 }
 0x97f   :  { %2612 = vsyncpa [#allocation8], 1 }
 0x980   :  { %2614 = vsyncpa [#allocation8 + $0x1], 1 }

</bundles_post_ra>
